<compile_context>
chip_gen: v6e
topology: v6e:2x2x1
jax: 0.10.0
libtpu: 0.0.40
codegen_flags: <defaults>
</compile_context>

<pallas_src>
import functools

import jax
import jax.numpy as jnp
from jax.experimental import pallas as pl
from jax.experimental.pallas import tpu as pltpu


# ----------------------------- Pallas kernel ------------------------------ #
def _conv_bn_silu_kernel(x_ref, w_ref, shift_ref, o_ref, lhs_ref, *,
                         kh, kw, sh, sw, h_out, w_out, m_h, m_blk, approx_silu):
    """One (image, C_out-tile) grid step.

    x_ref:     (1, sh*sw*m_h, m_w, C_in)   stride-phase padded NHWC image
    w_ref:     (kh, kw*C_in, CO_TILE)      conv weight, BN scale folded, kw in K
    shift_ref: (1, CO_TILE)                folded BN shift (f32)
    o_ref:     (1, h_out*w_out, CO_TILE)   output tile (bf16 by default)
    lhs_ref:   (kh, h_out*w_out, kw*C_in)  VMEM scratch, built once per image
    """
    c_in = x_ref.shape[-1]
    k_dim = kw * c_in
    m_total = h_out * w_out
    co_tile = o_ref.shape[-1]

    # ---- Build the kh folded LHS slabs once per image (C_out tile 0). -----
    # The C_out grid axis varies fastest and x is invariant in it, so later
    # C_out tiles reuse the scratch instead of redoing the slab copies.
    @pl.when(pl.program_id(1) == 0)
    def _build_lhs():
        for ki in range(kh):
            pi, qi = ki % sh, ki // sh          # stride phase / offset (rows)
            parts = []
            for kj in range(kw):
                pj, qj = kj % sw, kj // sw      # stride phase / offset (cols)
                row0 = (pi * sw + pj) * m_h + qi
                # (h_out, w_out, C_in) shifted window; all slices unstrided.
                parts.append(x_ref[0, row0:row0 + h_out, qj:qj + w_out, :])
            lhs = parts[0] if kw == 1 else jnp.concatenate(parts, axis=-1)
            lhs_ref[ki] = lhs.reshape(m_total, k_dim)

    # ---- kh matmuls (K = kw*C_in), M-blocked, fused BN shift + SiLU. -------
    shift = shift_ref[...]                       # (1, CO_TILE) f32, broadcasts
    n_blk = (m_total + m_blk - 1) // m_blk
    for b in range(n_blk):
        m0 = b * m_blk
        mlen = min(m_blk, m_total - m0)
        acc = jnp.zeros((mlen, co_tile), jnp.float32)
        for ki in range(kh):
            acc = acc + jnp.dot(lhs_ref[ki, m0:m0 + mlen, :], w_ref[ki],
                                preferred_element_type=jnp.float32)
        y = acc + shift                          # epilogue in f32 (v5e-safe)
        den = 1.0 + jnp.exp(-y)                  # exp on the EUP
        if approx_silu:
            out = y * pl.reciprocal(den, approx=True)   # divide on the EUP too
        else:
            out = y / den
        o_ref[0, m0:m0 + mlen, :] = out.astype(o_ref.dtype)


# ------------------------------ Wrapper ------------------------------------ #
def conv_layer_forward(x_nchw, weight, bn_gamma, bn_beta, bn_mean, bn_var,
                       *, stride=(1, 1), eps=1e-5,
                       compute_dtype=jnp.bfloat16, out_dtype=None,
                       co_tile=None, m_blk=512, approx_silu=True):
    """ConvLayer forward: Conv2d(no bias) -> BatchNorm2d(eval) -> SiLU.

    x_nchw: (N, C_in, H, W) float32
    weight: (C_out, C_in, kh, kw) float32  (groups == 1)
    returns (N, C_out, H_out, W_out) in `out_dtype` (default: compute_dtype).
    """
    N, C_in, H, W = x_nchw.shape
    C_out, C_in_w, kh, kw = weight.shape
    assert C_in_w == C_in, "groups != 1 not supported"
    assert kh % 2 == 1 and kw % 2 == 1, \
        "even kernel sizes change the PyTorch padding=(k-1)//2 semantics"
    if isinstance(stride, int):
        stride = (stride, stride)
    sh, sw = stride
    ph, pw = (kh - 1) // 2, (kw - 1) // 2
    h_out = (H + 2 * ph - kh) // sh + 1
    w_out = (W + 2 * pw - kw) // sw + 1
    # Phase-array extents (cover every window start; never less than padded).
    m_h = max(h_out + (kh - 1) // sh, -(-(H + 2 * ph) // sh))
    m_w = max(w_out + (kw - 1) // sw, -(-(W + 2 * pw) // sw))

    if out_dtype is None:
        out_dtype = compute_dtype
    if co_tile is None:
        c_ceil = ((C_out + 127) // 128) * 128
        co_tile = 256 if c_ceil % 256 == 0 else 128   # fill 256-wide MXU on v6e/v7x
    C_pad = ((C_out + co_tile - 1) // co_tile) * co_tile
    n_co = C_pad // co_tile

    # --- glue (XLA): NCHW -> padded NHWC (compute dtype) + stride phases ----
    x = jnp.transpose(x_nchw, (0, 2, 3, 1)).astype(compute_dtype)
    x = jnp.pad(x, ((0, 0), (ph, sh * m_h - H - ph), (pw, sw * m_w - W - pw), (0, 0)))
    if (sh, sw) == (1, 1):
        x_ph = x                                              # (N, m_h, m_w, C)
    else:
        # x_ph[n, (pi*sw+pj)*m_h + a, b, c] = x_pad[n, a*sh + pi, b*sw + pj, c]
        x_ph = x.reshape(N, m_h, sh, m_w, sw, C_in)
        x_ph = jnp.transpose(x_ph, (0, 2, 4, 1, 3, 5))
        x_ph = x_ph.reshape(N, sh * sw * m_h, m_w, C_in)

    # --- fold eval-mode BN: scale into the weight, keep only the shift ------
    inv_std = jax.lax.rsqrt(bn_var.astype(jnp.float32) + eps)
    scale = bn_gamma.astype(jnp.float32) * inv_std                 # (C_out,)
    shift = bn_beta.astype(jnp.float32) - bn_mean.astype(jnp.float32) * scale

    # (C_out, C_in, kh, kw) -> (kh, kw*C_in, C_pad): kw folded into K,
    # BN scale folded in, C_out lane-padded to a multiple of co_tile.
    w = jnp.transpose(weight.astype(jnp.float32), (2, 3, 1, 0))    # (kh,kw,Ci,Co)
    w = (w * scale[None, None, None, :]).reshape(kh, kw * C_in, C_out)
    w = jnp.pad(w, ((0, 0), (0, 0), (0, C_pad - C_out))).astype(compute_dtype)
    shift_p = jnp.pad(shift, (0, C_pad - C_out)).reshape(1, C_pad).astype(jnp.float32)

    m_total = h_out * w_out
    m_blk = max(8, min(m_blk, m_total))

    kernel = functools.partial(_conv_bn_silu_kernel, kh=kh, kw=kw, sh=sh, sw=sw,
                               h_out=h_out, w_out=w_out, m_h=m_h,
                               m_blk=m_blk, approx_silu=approx_silu)

    # Explicit VMEM budget: double-buffered blocks + the persistent LHS scratch.
    itm = jnp.dtype(compute_dtype).itemsize
    est = (2 * (sh * sw * m_h * m_w * C_in * itm            # image block
                + kh * kw * C_in * co_tile * itm            # weight block
                + co_tile * 4                               # shift block
                + m_total * co_tile * jnp.dtype(out_dtype).itemsize)  # out block
           + kh * m_total * kw * C_in * itm)                # lhs scratch
    vmem_limit = int(min(64 * 2**20, max(16 * 2**20, est * 5 // 4)))

    out = pl.pallas_call(
        kernel,
        out_shape=jax.ShapeDtypeStruct((N, m_total, C_pad), out_dtype),
        grid_spec=pltpu.PrefetchScalarGridSpec(
            num_scalar_prefetch=0,
            # C_out tiles vary fastest (and are "arbitrary") so the image block
            # and the LHS scratch stay resident across them; N is "parallel".
            grid=(N, n_co),
            in_specs=[
                pl.BlockSpec((1, sh * sw * m_h, m_w, C_in), lambda n, co: (n, 0, 0, 0)),
                pl.BlockSpec((kh, kw * C_in, co_tile), lambda n, co: (0, 0, co)),
                pl.BlockSpec((1, co_tile), lambda n, co: (0, co)),
            ],
            out_specs=pl.BlockSpec((1, m_total, co_tile), lambda n, co: (n, 0, co)),
            scratch_shapes=[pltpu.VMEM((kh, m_total, kw * C_in), compute_dtype)],
        ),
        compiler_params=pltpu.CompilerParams(
            dimension_semantics=("parallel", "arbitrary"),
            vmem_limit_bytes=vmem_limit,
        ),
    )(x_ph, w, shift_p)

    out = out[:, :, :C_out].reshape(N, h_out, w_out, C_out)
    return jnp.transpose(out, (0, 3, 1, 2))                  # back to NCHW


# ----------------------------- Reference ----------------------------------- #
def _reference(x_nchw, weight, bn_gamma, bn_beta, bn_mean, bn_var,
               *, stride=(1, 1), eps=1e-5):
    kh, kw = weight.shape[2], weight.shape[3]
    ph, pw = (kh - 1) // 2, (kw - 1) // 2
    y = jax.lax.conv_general_dilated(
        x_nchw, weight, window_strides=stride,
        padding=((ph, ph), (pw, pw)),
        dimension_numbers=("NCHW", "OIHW", "NCHW"))
    inv_std = 1.0 / jnp.sqrt(bn_var + eps)
    scale = (bn_gamma * inv_std)[None, :, None, None]
    shift = (bn_beta - bn_mean * bn_gamma * inv_std)[None, :, None, None]
    y = y * scale + shift
    return y * jax.nn.sigmoid(y)


# -------------------------------- Main -------------------------------------- #
if __name__ == "__main__":
    key = jax.random.PRNGKey(0)
    k_x, k_w, k_g, k_b, k_m, k_v = jax.random.split(key, 6)

    # Small shapes consistent with the module: ConvLayer(4 -> 8, kernel=3)
    N, C_in, H, W = 2, 4, 16, 16
    C_out, kh, kw = 8, 3, 3

    x = jax.random.normal(k_x, (N, C_in, H, W), dtype=jnp.float32)
    weight = jax.random.normal(k_w, (C_out, C_in, kh, kw), dtype=jnp.float32) * 0.1
    bn_gamma = 1.0 + 0.1 * jax.random.normal(k_g, (C_out,), dtype=jnp.float32)
    bn_beta = 0.1 * jax.random.normal(k_b, (C_out,), dtype=jnp.float32)
    bn_mean = 0.05 * jax.random.normal(k_m, (C_out,), dtype=jnp.float32)
    bn_var = 0.5 + jnp.abs(jax.random.normal(k_v, (C_out,), dtype=jnp.float32))
    bn = (bn_gamma, bn_beta, bn_mean, bn_var)

    # 1) stride 1, f32 operands + exact SiLU: tight check of the decomposition.
    ref1 = _reference(x, weight, *bn, stride=(1, 1))
    f1 = jax.jit(functools.partial(conv_layer_forward, stride=(1, 1),
                                   compute_dtype=jnp.float32, approx_silu=False))
    o1 = jax.block_until_ready(f1(x, weight, *bn))
    assert o1.shape == (N, C_out, H, W), o1.shape
    assert jnp.allclose(o1, ref1, atol=1e-4, rtol=1e-4), float(
        jnp.max(jnp.abs(o1 - ref1)))

    # 2) stride 1, default fast path (bf16 operands, bf16 output, approx SiLU).
    f2 = jax.jit(functools.partial(conv_layer_forward, stride=(1, 1)))
    o2 = jax.block_until_ready(f2(x, weight, *bn))
    assert o2.shape == (N, C_out, H, W), o2.shape
    assert jnp.allclose(o2.astype(jnp.float32), ref1, atol=5e-2, rtol=5e-2), float(
        jnp.max(jnp.abs(o2.astype(jnp.float32) - ref1)))

    # 3) stride 2 (downsampling ConvLayer), f32 exact path: in-kernel stride check.
    ref2 = _reference(x, weight, *bn, stride=(2, 2))
    f3 = jax.jit(functools.partial(conv_layer_forward, stride=(2, 2),
                                   compute_dtype=jnp.float32, approx_silu=False))
    o3 = jax.block_until_ready(f3(x, weight, *bn))
    assert o3.shape == (N, C_out, H // 2, W // 2), o3.shape
    assert jnp.allclose(o3, ref2, atol=1e-4, rtol=1e-4), float(
        jnp.max(jnp.abs(o3 - ref2)))

    # 4) stride 2, default fast path.
    f4 = jax.jit(functools.partial(conv_layer_forward, stride=(2, 2)))
    o4 = jax.block_until_ready(f4(x, weight, *bn))
    assert o4.shape == (N, C_out, H // 2, W // 2), o4.shape
    assert jnp.allclose(o4.astype(jnp.float32), ref2, atol=5e-2, rtol=5e-2), float(
        jnp.max(jnp.abs(o4.astype(jnp.float32) - ref2)))

    print("KERNEL_OK")
</pallas_src>

<mosaic_0001>
module attributes {stable_mosaic.version = 11 : i64} {
  func.func @_conv_bn_silu_kernel(%arg0: i32, %arg1: i32, %arg2: memref<1x18x18x4xf32, #tpu.memory_space<vmem>>, %arg3: memref<3x12x128xf32, #tpu.memory_space<vmem>>, %arg4: memref<1x128xf32, #tpu.memory_space<vmem>>, %arg5: memref<1x256x128xf32, #tpu.memory_space<vmem>>, %arg6: memref<3x256x12xf32, #tpu.memory_space<vmem>>) attributes {dimension_semantics = [#tpu.dimension_semantics<parallel>, #tpu.dimension_semantics<arbitrary>], iteration_bounds = array<i64: 2, 1>, scalar_prefetch = 0 : i64, scratch_operands = 1 : i64, tpu.core_type = #tpu.core_type<tc>, window_params = [{transform_indices = @transform_0, window_bounds = array<i64: 1, 18, 18, 4>}, {transform_indices = @transform_1, window_bounds = array<i64: 3, 12, 128>}, {transform_indices = @transform_2, window_bounds = array<i64: 1, 128>}, {transform_indices = @transform_3, window_bounds = array<i64: 1, 256, 128>}]} {
    %c0_i32 = arith.constant 0 : i32
    %0 = arith.cmpi eq, %arg1, %c0_i32 : i32
    %1 = arith.extui %0 : i1 to i32
    %c0_i32_0 = arith.constant 0 : i32
    %2 = arith.cmpi ne, %1, %c0_i32_0 : i32
    scf.if %2 {
      %c0_26 = arith.constant 0 : index
      %c0_27 = arith.constant 0 : index
      %c0_28 = arith.constant 0 : index
      %c0_29 = arith.constant 0 : index
      %34 = vector.load %arg2[%c0_26, %c0_27, %c0_28, %c0_29] : memref<1x18x18x4xf32, #tpu.memory_space<vmem>>, vector<1x16x16x4xf32>
      %35 = vector.shape_cast %34 : vector<1x16x16x4xf32> to vector<16x16x4xf32>
      %c0_30 = arith.constant 0 : index
      %c0_31 = arith.constant 0 : index
      %c1_32 = arith.constant 1 : index
      %c0_33 = arith.constant 0 : index
      %36 = vector.load %arg2[%c0_30, %c0_31, %c1_32, %c0_33] : memref<1x18x18x4xf32, #tpu.memory_space<vmem>>, vector<1x16x16x4xf32>
      %37 = vector.shape_cast %36 : vector<1x16x16x4xf32> to vector<16x16x4xf32>
      %c0_34 = arith.constant 0 : index
      %c0_35 = arith.constant 0 : index
      %c2_36 = arith.constant 2 : index
      %c0_37 = arith.constant 0 : index
      %38 = vector.load %arg2[%c0_34, %c0_35, %c2_36, %c0_37] : memref<1x18x18x4xf32, #tpu.memory_space<vmem>>, vector<1x16x16x4xf32>
      %39 = vector.shape_cast %38 : vector<1x16x16x4xf32> to vector<16x16x4xf32>
      %40 = tpu.concatenate %35, %37, %39 in 2 : vector<16x16x4xf32>, vector<16x16x4xf32>, vector<16x16x4xf32> -> vector<16x16x12xf32>
      %41 = vector.shape_cast %40 : vector<16x16x12xf32> to vector<256x12xf32>
      %c0_38 = arith.constant 0 : index
      %c0_39 = arith.constant 0 : index
      %c0_40 = arith.constant 0 : index
      %42 = vector.load %arg6[%c0_38, %c0_39, %c0_40] : memref<3x256x12xf32, #tpu.memory_space<vmem>>, vector<1x256x12xf32>
      %43 = vector.shape_cast %42 : vector<1x256x12xf32> to vector<256x12xf32>
      %44 = vector.shape_cast %41 : vector<256x12xf32> to vector<1x256x12xf32>
      tpu.vector_store %arg6[%c0_38, %c0_39, %c0_40], %44 {strides = array<i32>} : memref<3x256x12xf32, #tpu.memory_space<vmem>>, vector<1x256x12xf32>,
      %c0_41 = arith.constant 0 : index
      %c1_42 = arith.constant 1 : index
      %c0_43 = arith.constant 0 : index
      %c0_44 = arith.constant 0 : index
      %45 = vector.load %arg2[%c0_41, %c1_42, %c0_43, %c0_44] : memref<1x18x18x4xf32, #tpu.memory_space<vmem>>, vector<1x16x16x4xf32>
      %46 = vector.shape_cast %45 : vector<1x16x16x4xf32> to vector<16x16x4xf32>
      %c0_45 = arith.constant 0 : index
      %c1_46 = arith.constant 1 : index
      %c1_47 = arith.constant 1 : index
      %c0_48 = arith.constant 0 : index
      %47 = vector.load %arg2[%c0_45, %c1_46, %c1_47, %c0_48] : memref<1x18x18x4xf32, #tpu.memory_space<vmem>>, vector<1x16x16x4xf32>
      %48 = vector.shape_cast %47 : vector<1x16x16x4xf32> to vector<16x16x4xf32>
      %c0_49 = arith.constant 0 : index
      %c1_50 = arith.constant 1 : index
      %c2_51 = arith.constant 2 : index
      %c0_52 = arith.constant 0 : index
      %49 = vector.load %arg2[%c0_49, %c1_50, %c2_51, %c0_52] : memref<1x18x18x4xf32, #tpu.memory_space<vmem>>, vector<1x16x16x4xf32>
      %50 = vector.shape_cast %49 : vector<1x16x16x4xf32> to vector<16x16x4xf32>
      %51 = tpu.concatenate %46, %48, %50 in 2 : vector<16x16x4xf32>, vector<16x16x4xf32>, vector<16x16x4xf32> -> vector<16x16x12xf32>
      %52 = vector.shape_cast %51 : vector<16x16x12xf32> to vector<256x12xf32>
      %c1_53 = arith.constant 1 : index
      %c0_54 = arith.constant 0 : index
      %c0_55 = arith.constant 0 : index
      %53 = vector.load %arg6[%c1_53, %c0_54, %c0_55] : memref<3x256x12xf32, #tpu.memory_space<vmem>>, vector<1x256x12xf32>
      %54 = vector.shape_cast %53 : vector<1x256x12xf32> to vector<256x12xf32>
      %55 = vector.shape_cast %52 : vector<256x12xf32> to vector<1x256x12xf32>
      tpu.vector_store %arg6[%c1_53, %c0_54, %c0_55], %55 {strides = array<i32>} : memref<3x256x12xf32, #tpu.memory_space<vmem>>, vector<1x256x12xf32>,
      %c0_56 = arith.constant 0 : index
      %c2_57 = arith.constant 2 : index
      %c0_58 = arith.constant 0 : index
      %c0_59 = arith.constant 0 : index
      %56 = vector.load %arg2[%c0_56, %c2_57, %c0_58, %c0_59] : memref<1x18x18x4xf32, #tpu.memory_space<vmem>>, vector<1x16x16x4xf32>
      %57 = vector.shape_cast %56 : vector<1x16x16x4xf32> to vector<16x16x4xf32>
      %c0_60 = arith.constant 0 : index
      %c2_61 = arith.constant 2 : index
      %c1_62 = arith.constant 1 : index
      %c0_63 = arith.constant 0 : index
      %58 = vector.load %arg2[%c0_60, %c2_61, %c1_62, %c0_63] : memref<1x18x18x4xf32, #tpu.memory_space<vmem>>, vector<1x16x16x4xf32>
      %59 = vector.shape_cast %58 : vector<1x16x16x4xf32> to vector<16x16x4xf32>
      %c0_64 = arith.constant 0 : index
      %c2_65 = arith.constant 2 : index
      %c2_66 = arith.constant 2 : index
      %c0_67 = arith.constant 0 : index
      %60 = vector.load %arg2[%c0_64, %c2_65, %c2_66, %c0_67] : memref<1x18x18x4xf32, #tpu.memory_space<vmem>>, vector<1x16x16x4xf32>
      %61 = vector.shape_cast %60 : vector<1x16x16x4xf32> to vector<16x16x4xf32>
      %62 = tpu.concatenate %57, %59, %61 in 2 : vector<16x16x4xf32>, vector<16x16x4xf32>, vector<16x16x4xf32> -> vector<16x16x12xf32>
      %63 = vector.shape_cast %62 : vector<16x16x12xf32> to vector<256x12xf32>
      %c2_68 = arith.constant 2 : index
      %c0_69 = arith.constant 0 : index
      %c0_70 = arith.constant 0 : index
      %64 = vector.load %arg6[%c2_68, %c0_69, %c0_70] : memref<3x256x12xf32, #tpu.memory_space<vmem>>, vector<1x256x12xf32>
      %65 = vector.shape_cast %64 : vector<1x256x12xf32> to vector<256x12xf32>
      %66 = vector.shape_cast %63 : vector<256x12xf32> to vector<1x256x12xf32>
      tpu.vector_store %arg6[%c2_68, %c0_69, %c0_70], %66 {strides = array<i32>} : memref<3x256x12xf32, #tpu.memory_space<vmem>>, vector<1x256x12xf32>,
    } else {
    }
    %c0 = arith.constant 0 : index
    %c0_1 = arith.constant 0 : index
    %3 = vector.load %arg4[%c0, %c0_1] : memref<1x128xf32, #tpu.memory_space<vmem>>, vector<1x128xf32>
    %cst = arith.constant 0.000000e+00 : f32
    %4 = vector.broadcast %cst : f32 to vector<256x128xf32>
    %c0_2 = arith.constant 0 : index
    %c0_3 = arith.constant 0 : index
    %c0_4 = arith.constant 0 : index
    %5 = vector.load %arg6[%c0_2, %c0_3, %c0_4] : memref<3x256x12xf32, #tpu.memory_space<vmem>>, vector<1x256x12xf32>
    %6 = vector.shape_cast %5 : vector<1x256x12xf32> to vector<256x12xf32>
    %c0_5 = arith.constant 0 : index
    %c0_6 = arith.constant 0 : index
    %c0_7 = arith.constant 0 : index
    %7 = vector.load %arg3[%c0_5, %c0_6, %c0_7] : memref<3x12x128xf32, #tpu.memory_space<vmem>>, vector<1x12x128xf32>
    %8 = vector.shape_cast %7 : vector<1x12x128xf32> to vector<12x128xf32>
    %cst_8 = arith.constant dense<0.000000e+00> : vector<256x128xf32>
    %9 = tpu.matmul %6, %8, %cst_8 {dimension_numbers = #tpu.dot_dimension_numbers<[1], [0], [0], [1], [0, 0, 1, 1], [], []>} : vector<256x12xf32>, vector<12x128xf32>, vector<256x128xf32> -> vector<256x128xf32>
    %10 = arith.addf %4, %9 : vector<256x128xf32>
    %c1 = arith.constant 1 : index
    %c0_9 = arith.constant 0 : index
    %c0_10 = arith.constant 0 : index
    %11 = vector.load %arg6[%c1, %c0_9, %c0_10] : memref<3x256x12xf32, #tpu.memory_space<vmem>>, vector<1x256x12xf32>
    %12 = vector.shape_cast %11 : vector<1x256x12xf32> to vector<256x12xf32>
    %c1_11 = arith.constant 1 : index
    %c0_12 = arith.constant 0 : index
    %c0_13 = arith.constant 0 : index
    %13 = vector.load %arg3[%c1_11, %c0_12, %c0_13] : memref<3x12x128xf32, #tpu.memory_space<vmem>>, vector<1x12x128xf32>
    %14 = vector.shape_cast %13 : vector<1x12x128xf32> to vector<12x128xf32>
    %cst_14 = arith.constant dense<0.000000e+00> : vector<256x128xf32>
    %15 = tpu.matmul %12, %14, %cst_14 {dimension_numbers = #tpu.dot_dimension_numbers<[1], [0], [0], [1], [0, 0, 1, 1], [], []>} : vector<256x12xf32>, vector<12x128xf32>, vector<256x128xf32> -> vector<256x128xf32>
    %16 = arith.addf %10, %15 : vector<256x128xf32>
    %c2 = arith.constant 2 : index
    %c0_15 = arith.constant 0 : index
    %c0_16 = arith.constant 0 : index
    %17 = vector.load %arg6[%c2, %c0_15, %c0_16] : memref<3x256x12xf32, #tpu.memory_space<vmem>>, vector<1x256x12xf32>
    %18 = vector.shape_cast %17 : vector<1x256x12xf32> to vector<256x12xf32>
    %c2_17 = arith.constant 2 : index
    %c0_18 = arith.constant 0 : index
    %c0_19 = arith.constant 0 : index
    %19 = vector.load %arg3[%c2_17, %c0_18, %c0_19] : memref<3x12x128xf32, #tpu.memory_space<vmem>>, vector<1x12x128xf32>
    %20 = vector.shape_cast %19 : vector<1x12x128xf32> to vector<12x128xf32>
    %cst_20 = arith.constant dense<0.000000e+00> : vector<256x128xf32>
    %21 = tpu.matmul %18, %20, %cst_20 {dimension_numbers = #tpu.dot_dimension_numbers<[1], [0], [0], [1], [0, 0, 1, 1], [], []>} : vector<256x12xf32>, vector<12x128xf32>, vector<256x128xf32> -> vector<256x128xf32>
    %22 = arith.addf %16, %21 : vector<256x128xf32>
    %23 = vector.broadcast %3 : vector<1x128xf32> to vector<256x128xf32>
    %24 = arith.addf %22, %23 : vector<256x128xf32>
    %cst_21 = arith.constant 0.000000e+00 : f32
    %25 = vector.broadcast %cst_21 : f32 to vector<256x128xf32>
    %26 = arith.subf %25, %24 : vector<256x128xf32>
    %27 = math.exp %26 : vector<256x128xf32>
    %cst_22 = arith.constant 1.000000e+00 : f32
    %28 = vector.broadcast %cst_22 : f32 to vector<256x128xf32>
    %29 = arith.addf %28, %27 : vector<256x128xf32>
    %30 = arith.divf %24, %29 : vector<256x128xf32>
    %c0_23 = arith.constant 0 : index
    %c0_24 = arith.constant 0 : index
    %c0_25 = arith.constant 0 : index
    %31 = vector.load %arg5[%c0_23, %c0_24, %c0_25] : memref<1x256x128xf32, #tpu.memory_space<vmem>>, vector<1x256x128xf32>
    %32 = vector.shape_cast %31 : vector<1x256x128xf32> to vector<256x128xf32>
    %33 = vector.shape_cast %30 : vector<256x128xf32> to vector<1x256x128xf32>
    tpu.vector_store %arg5[%c0_23, %c0_24, %c0_25], %33 {strides = array<i32>} : memref<1x256x128xf32, #tpu.memory_space<vmem>>, vector<1x256x128xf32>,
    return
  }
  func.func @transform_0(%arg0: i32, %arg1: i32) -> (i32, i32, i32, i32) {
    %c0_i32 = arith.constant 0 : i32
    %c0_i32_0 = arith.constant 0 : i32
    %c0_i32_1 = arith.constant 0 : i32
    %c0_i32_2 = arith.constant 0 : i32
    return %arg0, %c0_i32, %c0_i32_0, %c0_i32_1 : i32, i32, i32, i32
  }
  func.func @transform_1(%arg0: i32, %arg1: i32) -> (i32, i32, i32) {
    %c0_i32 = arith.constant 0 : i32
    %c0_i32_0 = arith.constant 0 : i32
    %c0_i32_1 = arith.constant 0 : i32
    return %c0_i32, %c0_i32_0, %arg1 : i32, i32, i32
  }
  func.func @transform_2(%arg0: i32, %arg1: i32) -> (i32, i32) {
    %c0_i32 = arith.constant 0 : i32
    %c0_i32_0 = arith.constant 0 : i32
    return %c0_i32, %arg1 : i32, i32
  }
  func.func @transform_3(%arg0: i32, %arg1: i32) -> (i32, i32, i32) {
    %c0_i32 = arith.constant 0 : i32
    %c0_i32_0 = arith.constant 0 : i32
    return %arg0, %c0_i32, %arg1 : i32, i32, i32
  }
}

</mosaic_0001>

<bundles_post_ra>
// kernel: conv_layer_forward.1
= control target key start
LH: loop header
LB: loop body
LE: loop exit
PB: predicated region body
PF: predicated region fallthrough
CT: control target
= control target key end

     0   :  { %s3829_s12 = smov 0   ;;  %s3831_s13 = smov 0   ;;  %s5203_s0 = inlined_call_operand.vmem [shape: f32[2,18,18,4], index: 0, kind: input, shape index: {}]   ;;  %s5204_s1 = inlined_call_operand.vmem [shape: f32[3,12,128], index: 1, kind: input, shape index: {}]   ;;  %s5205_s2 = inlined_call_operand.vmem [shape: f32[1,128], index: 2, kind: input, shape index: {}]   ;;  %s5206_s3 = inlined_call_operand.vmem [shape: f32[2,256,128], index: 3, kind: output, shape index: {}]  }
   0x1   :  { %s3833_s14 = smov 0  }
   0x2 LB: > { %s25_s15 = sadd.s32 1, %s3801_s13  ;;  %p3063_p0 = scmp.ge.s32.totalorder %s3805_s14, 1  ;;  %s3805_s14 = sphi %s3833_s14, %s13_s14   ;;  %s3801_s13 = sphi %s3831_s13, %s5208_s13   ;;  %s3797_s12 = sphi %s3829_s12, %s5207_s12  }
   0x3   : > { %p27_p1 = scmp.ge.s32.totalorder %s25_s15, 2  ;;  %p168_p2 = scmp.lt.s32.totalorder %s3805_s14, 3 }
   0x5   : > { %s5210_s15 = smov (%p27_p1, %s25_s15), 0  ;;  %p169_p3 = pnand %p3063_p0, %p168_p2 }
   0x6   : > { %p202_p4 = scmp.lt.s32.totalorder (!%p169_p3), %s3797_s12, 1  ;;  %s3807_s20 = smov (!%p169_p3), 8  }
   0x7   : > { %172 = sbr.rel (%p169_p3) target bundleno = 759 (0x2f7), region = 32  ;;  %s3808_s21 = smov (!%p169_p3), 4  }
   0xc   : > { %s5212_s12 = smov (!%p202_p4, %s3797_s12), 1  ;;  %vm1745_vm0 = vcmask 1043456   ;;  %v3260_v14 = vld [vmem:[%s5204_s1 + $0x18] sm:$0xf]  ;;  %v3259_v17 = vld [vmem:[%s5204_s1 + $0x10] sm:$0xff]  ;;  %vm578_vm1 = vcmask 31744  }
   0xd   : > { %s3628_s16 = smul.u32 432, %s5212_s12  ;;  %3624 = vmatprep.subr.msk.mxu1 %vm1745_vm0, %v3260_v14  ;;  %3468 = vmatprep.subr.msk.mxu0 %vm1745_vm0, %v3260_v14  ;;  %vm611_vm2 = vcmask 64512   ;;  %vm644_vm3 = vcmask 97280   ;;  %s3365_s9 = sshll.u32 %s5212_s12, 8 }
   0xe   : > { %3626 = vmatpush3.msk.msra.mxu1 %vm1745_vm0, %v3260_v14  ;;  %3469 = vmatpush3.msk.msra.mxu0 %vm1745_vm0, %v3260_v14  ;;  %s5031_s12 = scalar_lea.vmem %s5206_s3, %s3365_s9 }
   0xf   : > { %s3853_s19 = scalar_lea.vmem %s5203_s0, %s3628_s16  ;;  %3625 = vmatprep.subr.mxu1 %v3259_v17  ;;  %3470 = vmatprep.subr.mxu0 %v3259_v17 }
  0x10   : > { %v3147_v0 = vld [vmem:[%s3853_s19 + $0xda] sm:$0xff]  ;;  %v3148_v4 = vld [vmem:[%s3853_s19 + $0xe2] sm:$0xff]  ;;  %v3117_v7 = vld [vmem:[%s3853_s19 + $0xf1] sm:$0xff]  ;;  %3627 = vmatpush3.msra.mxu1 %v3259_v17  ;;  %3471 = vmatpush3.msra.mxu0 %v3259_v17 }
  0x11   : > { %v3115_v1 = vld [vmem:[%s3853_s19 + $0xd9] sm:$0xff]  ;;  %966 = vrot.lane.b32.xlu1 %v3147_v0, %s3807_s20  ;;  %v3116_v2 = vld [vmem:[%s3853_s19 + $0xe1] sm:$0xff]  ;;  %v3889_v11 = vld [vmem:[%s3853_s19 + $0x31] sm:$0xff] }
  0x12   : > { %838 = vrot.lane.b32.xlu0 %v3115_v1, %s3808_s21  ;;  %v3861_v3 = vld [vmem:[%s3853_s19 + $0x19] sm:$0xff]  ;;  %v3868_v5 = vld [vmem:[%s3853_s19 + $0x21] sm:$0xff]  ;;  %v3119_v16 = vld [vmem:[%s3853_s19 + $0x109] sm:$0xff] }
  0x13   : > { %v3874_v6 = vld [vmem:[%s3853_s19 + $0x1a] sm:$0xff]  ;;  %v3881_v8 = vld [vmem:[%s3853_s19 + $0x22] sm:$0xff]  ;;  %v3149_v10 = vld [vmem:[%s3853_s19 + $0xf2] sm:$0xff] }
  0x14   : > { %v3118_v9 = vld [vmem:[%s3853_s19 + $0xf9] sm:$0xff]  ;;  %v3120_v19 = vld [vmem:[%s3853_s19 + $0x111] sm:$0xff]  ;;  %v3927_v21 = vld [vmem:[%s3853_s19 + $0x49] sm:$0xff] }
  0x15   : > { %806 = vrot.lane.b32.xlu1 %v3861_v3, %s3808_s21  ;;  %v3150_v12 = vld [vmem:[%s3853_s19 + $0xfa] sm:$0xff]  ;;  %v3905_v15 = vld [vmem:[%s3853_s19 + $0x32] sm:$0xff]  ;;  %v3151_v20 = vld [vmem:[%s3853_s19 + $0x10a] sm:$0xff] }
  0x16   : > { %840 = vrot.lane.b32.xlu0 %v3116_v2, %s3808_s21  ;;  %v3896_v13 = vld [vmem:[%s3853_s19 + $0x39] sm:$0xff]  ;;  %v3934_v23 = vld [vmem:[%s3853_s19 + $0x51] sm:$0xff]  ;;  %v3121_v25 = vld [vmem:[%s3853_s19 + $0x121] sm:$0xff] }
  0x17   : > { %v3919_v18 = vld [vmem:[%s3853_s19 + $0x3a] sm:$0xff]  ;;  %v3152_v22 = vld [vmem:[%s3853_s19 + $0x112] sm:$0xff]  ;;  %v3940_v24 = vld [vmem:[%s3853_s19 + $0x4a] sm:$0xff] }
  0x18   : > { %v3947_v26 = vld [vmem:[%s3853_s19 + $0x52] sm:$0xff]  ;;  %v3122_v27 = vld [vmem:[%s3853_s19 + $0x129] sm:$0xff]  ;;  %v3955_v29 = vld [vmem:[%s3853_s19 + $0x61] sm:$0xff] }
  0x19   : > { %808 = vrot.lane.b32.xlu1 %v3868_v5, %s3808_s21  ;;  %v3153_v28 = vld [vmem:[%s3853_s19 + $0x122] sm:$0xff]  ;;  %v3154_v30 = vld [vmem:[%s3853_s19 + $0x12a] sm:$0xff]  ;;  %v3123_v33 = vld [vmem:[%s3853_s19 + $0x139] sm:$0xff] }
  0x1a   : > { %968 = vrot.lane.b32.xlu0 %v3148_v4, %s3807_s20  ;;  %v3962_v31 = vld [vmem:[%s3853_s19 + $0x69] sm:$0xff]  ;;  %v3124_v35 = vld [vmem:[%s3853_s19 + $0x141] sm:$0xff]  ;;  %v3983_v37 = vld [vmem:[%s3853_s19 + $0x79] sm:$0xff] }
  0x1b   : > { %v3968_v32 = vld [vmem:[%s3853_s19 + $0x62] sm:$0xff]  ;;  %v3975_v34 = vld [vmem:[%s3853_s19 + $0x6a] sm:$0xff]  ;;  %v3155_v36 = vld [vmem:[%s3853_s19 + $0x13a] sm:$0xff] }
  0x1c   : > { %v3156_v38 = vld [vmem:[%s3853_s19 + $0x142] sm:$0xff]  ;;  %v3996_v40 = vld [vmem:[%s3853_s19 + $0x7a] sm:$0xff]  ;;  %v3125_v41 = vld [vmem:[%s3853_s19 + $0x151] sm:$0xff] }
  0x1d   : > { %842 = vrot.lane.b32.xlu1 %v3117_v7, %s3808_s21  ;;  %v3990_v39 = vld [vmem:[%s3853_s19 + $0x81] sm:$0xff]  ;;  %v3126_v43 = vld [vmem:[%s3853_s19 + $0x159] sm:$0xff]  ;;  %v4011_v45 = vld [vmem:[%s3853_s19 + $0x91] sm:$0xff] }
  0x1e   : > { %934 = vrot.lane.b32.xlu0 %v3874_v6, %s3807_s20  ;;  %v4003_v42 = vld [vmem:[%s3853_s19 + $0x82] sm:$0xff]  ;;  %v3157_v44 = vld [vmem:[%s3853_s19 + $0x152] sm:$0xff]  ;;  %v3158_v46 = vld [vmem:[%s3853_s19 + $0x15a] sm:$0xff] }
  0x1f   : > { %v4018_v47 = vld [vmem:[%s3853_s19 + $0x99] sm:$0xff]  ;;  %v3127_v49 = vld [vmem:[%s3853_s19 + $0x169] sm:$0xff]  ;;  %v3128_v51 = vld [vmem:[%s3853_s19 + $0x171] sm:$0xff] }
  0x20   : > { %v4024_v48 = vld [vmem:[%s3853_s19 + $0x92] sm:$0xff]  ;;  %v4031_v50 = vld [vmem:[%s3853_s19 + $0x9a] sm:$0xff]  ;;  %v3159_v52 = vld [vmem:[%s3853_s19 + $0x16a] sm:$0xff] }
  0x21   : > { %844 = vrot.lane.b32.xlu1 %v3118_v9, %s3808_s21  ;;  %v4039_v53 = vld [vmem:[%s3853_s19 + $0xa9] sm:$0xff]  ;;  %v3160_v54 = vld [vmem:[%s3853_s19 + $0x172] sm:$0xff]  ;;  %v3129_v57 = vld [vmem:[%s3853_s19 + $0x181] sm:$0xff] }
  0x22   : > { %936 = vrot.lane.b32.xlu0 %v3881_v8, %s3807_s20  ;;  %v4046_v55 = vld [vmem:[%s3853_s19 + $0xb1] sm:$0xff]  ;;  %v3130_v59 = vld [vmem:[%s3853_s19 + $0x189] sm:$0xff]  ;;  %v4068_v62 = vld [vmem:[%s3853_s19 + $0xc1] sm:$0xff] }
  0x23   : > { %v4052_v56 = vld [vmem:[%s3853_s19 + $0xaa] sm:$0xff]  ;;  %v4059_v58 = vld [vmem:[%s3853_s19 + $0xb2] sm:$0xff]  ;;  %v3161_v61 = vld [vmem:[%s3853_s19 + $0x182] sm:$0xff] }
  0x24   : > { %v3083_v60 = vld [vmem:[%s3853_s19 + $0xd8] sm:$0xff]  ;;  %v3162_v4 = vld [vmem:[%s3853_s19 + $0x18a] sm:$0xff]  ;;  %v4085_v14 = vld [vmem:[%s3853_s19 + $0xc2] sm:$0xff] }
  0x25   : > { %810 = vrot.lane.b32.xlu1 %v3889_v11, %s3808_s21  ;;  %v4078_v7 = vld [vmem:[%s3853_s19 + $0xc9] sm:$0xff] }
  0x26   : > { %970 = vrot.lane.b32.xlu0 %v3149_v10, %s3807_s20 }
  0x29   : > { %812 = vrot.lane.b32.xlu1 %v3896_v13, %s3808_s21 }
  0x2a   : > { %972 = vrot.lane.b32.xlu0 %v3150_v12, %s3807_s20  ;;  %v3084_v12 = vld [vmem:[%s3853_s19 + $0xe0] sm:$0xff] }
  0x2d   : > { %846 = vrot.lane.b32.xlu1 %v3119_v16, %s3808_s21  ;;  %v258_v16 = vld [vmem:[%s3853_s19 + $0x1] sm:$0xff] }
  0x2e   : > { %938 = vrot.lane.b32.xlu0 %v3905_v15, %s3807_s20 }
  0x31   : > { %848 = vrot.lane.b32.xlu1 %v3120_v19, %s3808_s21 }
  0x32   : > { %940 = vrot.lane.b32.xlu0 %v3919_v18, %s3807_s20 }
  0x35   : > { %814 = vrot.lane.b32.xlu1 %v3927_v21, %s3808_s21 }
  0x36   : > { %974 = vrot.lane.b32.xlu0 %v3151_v20, %s3807_s20 }
  0x39   : > { %816 = vrot.lane.b32.xlu1 %v3934_v23, %s3808_s21 }
  0x3a   : > { %976 = vrot.lane.b32.xlu0 %v3152_v22, %s3807_s20  ;;  %v4090_v22 = vld [vmem:[%s3853_s19 + $0x18] sm:$0xff] }
  0x3d   : > { %850 = vrot.lane.b32.xlu1 %v3121_v25, %s3808_s21 }
  0x3e   : > { %942 = vrot.lane.b32.xlu0 %v3940_v24, %s3807_s20 }
  0x41   : > { %852 = vrot.lane.b32.xlu1 %v3122_v27, %s3808_s21 }
  0x42   : > { %944 = vrot.lane.b32.xlu0 %v3947_v26, %s3807_s20 }
  0x45   : > { %818 = vrot.lane.b32.xlu1 %v3955_v29, %s3808_s21 }
  0x46   : > { %978 = vrot.lane.b32.xlu0 %v3153_v28, %s3807_s20  ;;  %v4099_v28 = vld [vmem:[%s3853_s19 + $0xca] sm:$0xff] }
  0x49   : > { %820 = vrot.lane.b32.xlu1 %v3962_v31, %s3808_s21 }
  0x4a   : > { %980 = vrot.lane.b32.xlu0 %v3154_v30, %s3807_s20  ;;  %v259_v30 = vld [vmem:[%s3853_s19 + $0x9] sm:$0xff] }
  0x4d   : > { %854 = vrot.lane.b32.xlu1 %v3123_v33, %s3808_s21  ;;  %v1611_v33 = vld [vmem:[%s5204_s1 + $0x8] sm:$0xf] }
  0x4e   : > { %946 = vrot.lane.b32.xlu0 %v3968_v32, %s3807_s20  ;;  %3520 = vmatprep.subr.msk.mxu1 %vm1745_vm0, %v1611_v33 }
  0x51   : > { %856 = vrot.lane.b32.xlu1 %v3124_v35, %s3808_s21 }
  0x52   : > { %948 = vrot.lane.b32.xlu0 %v3975_v34, %s3807_s20 }
  0x55   : > { %822 = vrot.lane.b32.xlu1 %v3983_v37, %s3808_s21 }
  0x56   : > { %982 = vrot.lane.b32.xlu0 %v3155_v36, %s3807_s20 }
  0x59   : > { %824 = vrot.lane.b32.xlu1 %v3990_v39, %s3808_s21 }
  0x5a   : > { %984 = vrot.lane.b32.xlu0 %v3156_v38, %s3807_s20 }
  0x5d   : > { %858 = vrot.lane.b32.xlu1 %v3125_v41, %s3808_s21  ;;  %v4109_v41 = vld [vmem:[%s3853_s19 + $0x20] sm:$0xff] }
  0x5e   : > { %950 = vrot.lane.b32.xlu0 %v3996_v40, %s3807_s20 }
  0x61   : > { %860 = vrot.lane.b32.xlu1 %v3126_v43, %s3808_s21 }
  0x62   : > { %952 = vrot.lane.b32.xlu0 %v4003_v42, %s3807_s20 }
  0x65   : > { %826 = vrot.lane.b32.xlu1 %v4011_v45, %s3808_s21 }
  0x66   : > { %986 = vrot.lane.b32.xlu0 %v3157_v44, %s3807_s20  ;;  %v290_v44 = vld [vmem:[%s3853_s19 + $0x2] sm:$0xff] }
  0x69   : > { %828 = vrot.lane.b32.xlu1 %v4018_v47, %s3808_s21 }
  0x6a   : > { %988 = vrot.lane.b32.xlu0 %v3158_v46, %s3807_s20 }
  0x6d   : > { %862 = vrot.lane.b32.xlu1 %v3127_v49, %s3808_s21 }
  0x6e   : > { %954 = vrot.lane.b32.xlu0 %v4024_v48, %s3807_s20 }
  0x71   : > { %864 = vrot.lane.b32.xlu1 %v3128_v51, %s3808_s21 }
  0x72   : > { %956 = vrot.lane.b32.xlu0 %v4031_v50, %s3807_s20 }
  0x75   : > { %830 = vrot.lane.b32.xlu1 %v4039_v53, %s3808_s21 }
  0x76   : > { %990 = vrot.lane.b32.xlu0 %v3159_v52, %s3807_s20  ;;  %v291_v52 = vld [vmem:[%s3853_s19 + $0xa] sm:$0xff] }
  0x79   : > { %832 = vrot.lane.b32.xlu1 %v4046_v55, %s3808_s21 }
  0x7a   : > { %992 = vrot.lane.b32.xlu0 %v3160_v54, %s3807_s20  ;;  %v3085_v54 = vld [vmem:[%s3853_s19 + $0xf0] sm:$0xff] }
  0x7d   : > { %866 = vrot.lane.b32.xlu1 %v3129_v57, %s3808_s21 }
  0x7e   : > { %958 = vrot.lane.b32.xlu0 %v4052_v56, %s3807_s20 }
  0x81   : > { %868 = vrot.lane.b32.xlu1 %v3130_v59, %s3808_s21 }
  0x82   : > { %960 = vrot.lane.b32.xlu0 %v4059_v58, %s3807_s20 }
  0x83   : > { %v967_v63 = vpop.permute.xlu1 %966 }
  0x84   : > { %v839_v0 = vpop.permute.xlu0 %838 }
  0x85   : > { %v1046_v1 = vsel %vm578_vm1, %v3083_v60, %v839_v0  ;;  %834 = vrot.lane.b32.xlu1 %v4068_v62, %s3808_s21  ;;  %v1610_v60 = vld [vmem:[%s5204_s1] sm:$0xff] }
  0x86   : > { %v1078_v2 = vsel %vm611_vm2, %v1046_v1, %v967_v63  ;;  %994 = vrot.lane.b32.xlu0 %v3161_v61, %s3807_s20  ;;  %v3086_v1 = vld [vmem:[%s3853_s19 + $0xf8] sm:$0xff] }
  0x87   : > { %1111 = vst.msk [vmem:[#allocation2 + $0x180] sm:$0xff] %vm644_vm3, %v1078_v2  ;;  %v807_v10 = vpop.permute.xlu1 %806 }
  0x88   : > { %v841_v9 = vpop.permute.xlu0 %840  ;;  %v1030_v35 = vsel %vm578_vm1, %v4090_v22, %v807_v10 }
  0x89   : > { %836 = vrot.lane.b32.xlu1 %v4078_v7, %s3808_s21  ;;  %v1047_v17 = vsel %vm578_vm1, %v3084_v12, %v841_v9  ;;  %v3328_v9 = vld [vmem:[%s5204_s1 + $0x28] sm:$0xf] }
  0x8a   : > { %996 = vrot.lane.b32.xlu0 %v3162_v4, %s3807_s20  ;;  %3572 = vmatprep.subr.msk.mxu0 %vm1745_vm0, %v3328_v9 }
  0x8b   : > { %v809_v20 = vpop.permute.xlu1 %808 }
  0x8c   : > { %v969_v19 = vpop.permute.xlu0 %968  ;;  %v1031_v46 = vsel %vm578_vm1, %v4109_v41, %v809_v20 }
  0x8d   : > { %v1079_v25 = vsel %vm611_vm2, %v1047_v17, %v969_v19  ;;  %354 = vrot.lane.b32.xlu1 %v258_v16, %s3808_s21  ;;  %v4145_v17 = vld [vmem:[%s3853_s19 + $0x30] sm:$0xff] }
  0x8e   : > { %1112 = vst.msk [vmem:[#allocation2 + $0x188] sm:$0xff] %vm644_vm3, %v1079_v25  ;;  %962 = vrot.lane.b32.xlu0 %v4085_v14, %s3807_s20  ;;  %v1629_v27 = vld [vmem:[#allocation2 + $0x180] sm:$0xff] }
  0x8f   : > { %3496 = vmatprep.mubr.msk.f32.mxu1 %vm644_vm3, %v1629_v27  ;;  %v843_v38 = vpop.permute.xlu1 %842  ;;  %v3327_v25 = vld [vmem:[%s5204_s1 + $0x20] sm:$0xff] }
  0x90   : > { %v935_v36 = vpop.permute.xlu0 %934  ;;  %v1048_v61 = vsel %vm578_vm1, %v3085_v54, %v843_v38 }
  0x91   : > { %v1062_v43 = vsel %vm611_vm2, %v1030_v35, %v935_v36  ;;  %356 = vrot.lane.b32.xlu1 %v259_v30, %s3808_s21  ;;  %v4161_v35 = vld [vmem:[%s3853_s19 + $0x38] sm:$0xff] }
  0x92   : > { %1095 = vst.msk [vmem:[#allocation2 + $0x100] sm:$0xff] %vm644_vm3, %v1062_v43  ;;  %964 = vrot.lane.b32.xlu0 %v4099_v28, %s3807_s20 }
  0x93   : > { %v845_v51 = vpop.permute.xlu1 %844 }
  0x94   : > { %v937_v49 = vpop.permute.xlu0 %936  ;;  %v1049_v10 = vsel %vm578_vm1, %v3086_v1, %v845_v51 }
  0x95   : > { %v1063_v57 = vsel %vm611_vm2, %v1031_v46, %v937_v49  ;;  %v1630_v59 = vld [vmem:[#allocation2 + $0x188] sm:$0xff]  ;;  %484 = vrot.lane.b32.xlu1 %v291_v52, %s3807_s20 }
  0x96   : > { %1096 = vst.msk [vmem:[#allocation2 + $0x108] sm:$0xff] %vm644_vm3, %v1063_v57  ;;  %3497 = vmatmul.mubr.msk.f32.vlgmr.msra.gmra.mxu1 %vm644_vm3, %v1630_v59  ;;  %482 = vrot.lane.b32.xlu0 %v290_v44, %s3807_s20  ;;  %v3087_v46 = vld [vmem:[%s3853_s19 + $0x108] sm:$0xff]  ;;  %v3088_v57 = vld [vmem:[%s3853_s19 + $0x110] sm:$0xff] }
  0x97   : > { %3521 = vmatpush3.msk.msra.mxu1 %vm1745_vm0, %v1611_v33  ;;  %v811_v0 = vpop.permute.xlu1 %810 }
  0x98   : > { %v971_v63 = vpop.permute.xlu0 %970  ;;  %3522 = vmatprep.subr.mxu1 %v1610_v60  ;;  %v1032_v27 = vsel %vm578_vm1, %v4145_v17, %v811_v0 }
  0x99   : > { %v1080_v2 = vsel %vm611_vm2, %v1048_v61, %v971_v63  ;;  %v1613_v4 = vld [vmem:[#allocation2 + $0x100] sm:$0xff]  ;;  %3523 = vmatpush3.msra.mxu1 %v1610_v60  ;;  %1258 = vrot.lane.b32.xlu1 %v3896_v13, %s3808_s21  ;;  %v4191_v63 = vld [vmem:[%s3853_s19 + $0x48] sm:$0xff] }
  0x9a   : > { %1113 = vst.msk [vmem:[#allocation2 + $0x190] sm:$0xff] %vm644_vm3, %v1080_v2  ;;  %3472 = vmatprep.mubr.msk.f32.mxu0 %vm644_vm3, %v1613_v4  ;;  %1256 = vrot.lane.b32.xlu0 %v3889_v11, %s3808_s21 }
  0x9b   : > { %v813_v16 = vpop.permute.xlu1 %812 }
  0x9c   : > { %v973_v12 = vpop.permute.xlu0 %972 }
  0x9d   : > { %v1081_v19 = vsel %vm611_vm2, %v1049_v10, %v973_v12  ;;  %v1614_v20 = vld [vmem:[#allocation2 + $0x108] sm:$0xff]  ;;  %358 = vrot.lane.b32.xlu1 %v3861_v3, %s3808_s21  ;;  %v1033_v3 = vsel %vm578_vm1, %v4161_v35, %v813_v16  ;;  %v4203_v10 = vld [vmem:[%s3853_s19 + $0x50] sm:$0xff] }
  0x9e   : > { %1114 = vst.msk [vmem:[#allocation2 + $0x198] sm:$0xff] %vm644_vm3, %v1081_v19  ;;  %3473 = vmatmul.mubr.msk.f32.vlgmr.msra.gmra.mxu0 %vm644_vm3, %v1614_v20  ;;  %1384 = vrot.lane.b32.xlu0 %v3905_v15, %s3807_s20 }
  0x9f   : > { %3573 = vmatpush3.msk.msra.mxu0 %vm1745_vm0, %v3328_v9  ;;  %v847_v33 = vpop.permute.xlu1 %846 }
  0xa0   : > { %v939_v30 = vpop.permute.xlu0 %938  ;;  %3574 = vmatprep.subr.mxu0 %v3327_v25 }
  0xa1   : > { %v1064_v36 = vsel %vm611_vm2, %v1032_v27, %v939_v30  ;;  %v1631_v38 = vld [vmem:[#allocation2 + $0x190] sm:$0xff]  ;;  %3575 = vmatpush3.msra.mxu0 %v3327_v25  ;;  %360 = vrot.lane.b32.xlu1 %v3868_v5, %s3808_s21  ;;  %v1050_v5 = vsel %vm578_vm1, %v3087_v46, %v847_v33  ;;  %v3089_v25 = vld [vmem:[%s3853_s19 + $0x120] sm:$0xff] }
  0xa2   : > { %1097 = vst.msk [vmem:[#allocation2 + $0x110] sm:$0xff] %vm644_vm3, %v1064_v36  ;;  %3499 = vmatprep.mubr.msk.f32.mxu1 %vm644_vm3, %v1631_v38  ;;  %1386 = vrot.lane.b32.xlu0 %v3919_v18, %s3807_s20  ;;  %v3090_v38 = vld [vmem:[%s3853_s19 + $0x128] sm:$0xff]  ;;  %v4233_v46 = vld [vmem:[%s3853_s19 + $0x60] sm:$0xff] }
  0xa3   : > { %v849_v44 = vpop.permute.xlu1 %848 }
  0xa4   : > { %v941_v43 = vpop.permute.xlu0 %940 }
  0xa5   : > { %v1065_v49 = vsel %vm611_vm2, %v1033_v3, %v941_v43  ;;  %v1632_v51 = vld [vmem:[#allocation2 + $0x198] sm:$0xff]  ;;  %488 = vrot.lane.b32.xlu1 %v3881_v8, %s3807_s20 }
  0xa6   : > { %1098 = vst.msk [vmem:[#allocation2 + $0x118] sm:$0xff] %vm644_vm3, %v1065_v49  ;;  %3500 = vmatmul.mubr.msk.f32.gmra.mxu1 %vm644_vm3, %v1632_v51  ;;  %486 = vrot.lane.b32.xlu0 %v3874_v6, %s3807_s20  ;;  %v1051_v6 = vsel %vm578_vm1, %v3088_v57, %v849_v44  ;;  %v4245_v57 = vld [vmem:[%s3853_s19 + $0x68] sm:$0xff] }
  0xa7   : > { %v815_v54 = vpop.permute.xlu1 %814 }
  0xa8   : > { %v975_v52 = vpop.permute.xlu0 %974  ;;  %v1034_v2 = vsel %vm578_vm1, %v4191_v63, %v815_v54 }
  0xa9   : > { %v1082_v59 = vsel %vm611_vm2, %v1050_v5, %v975_v52  ;;  %v1615_v60 = vld [vmem:[#allocation2 + $0x110] sm:$0xff]  ;;  %1262 = vrot.lane.b32.xlu1 %v3934_v23, %s3808_s21 }
  0xaa   : > { %1115 = vst.msk [vmem:[#allocation2 + $0x1a0] sm:$0xff] %vm644_vm3, %v1082_v59  ;;  %3475 = vmatprep.mubr.msk.f32.mxu0 %vm644_vm3, %v1615_v60  ;;  %1260 = vrot.lane.b32.xlu0 %v3927_v21, %s3808_s21 }
  0xab   : > { %v817_v61 = vpop.permute.xlu1 %816 }
  0xac   : > { %v977_v8 = vpop.permute.xlu0 %976 }
  0xad   : > { %v1083_v0 = vsel %vm611_vm2, %v1051_v6, %v977_v8  ;;  %v1616_v1 = vld [vmem:[#allocation2 + $0x118] sm:$0xff]  ;;  %362 = vrot.lane.b32.xlu1 %v3889_v11, %s3808_s21  ;;  %v1035_v11 = vsel %vm578_vm1, %v4203_v10, %v817_v61 }
  0xae   : > { %1116 = vst.msk [vmem:[#allocation2 + $0x1a8] sm:$0xff] %vm644_vm3, %v1083_v0  ;;  %3476 = vmatmul.mubr.msk.f32.gmra.mxu0 %vm644_vm3, %v1616_v1  ;;  %1388 = vrot.lane.b32.xlu0 %v3940_v24, %s3807_s20  ;;  %v3091_v61 = vld [vmem:[%s3853_s19 + $0x138] sm:$0xff] }
  0xaf   : > { %v851_v9 = vpop.permute.xlu1 %850 }
  0xb0   : > { %v943_v4 = vpop.permute.xlu0 %942 }
  0xb1   : > { %v1066_v12 = vsel %vm611_vm2, %v1034_v2, %v943_v4  ;;  %v1633_v16 = vld [vmem:[#allocation2 + $0x1a0] sm:$0xff]  ;;  %364 = vrot.lane.b32.xlu1 %v3896_v13, %s3808_s21  ;;  %v1052_v13 = vsel %vm578_vm1, %v3089_v25, %v851_v9 }
  0xb2   : > { %1099 = vst.msk [vmem:[#allocation2 + $0x120] sm:$0xff] %vm644_vm3, %v1066_v12  ;;  %3502 = vmatprep.mubr.msk.f32.mxu1 %vm644_vm3, %v1633_v16  ;;  %1390 = vrot.lane.b32.xlu0 %v3947_v26, %s3807_s20  ;;  %v3092_v9 = vld [vmem:[%s3853_s19 + $0x140] sm:$0xff] }
  0xb3   : > { %v853_v20 = vpop.permute.xlu1 %852 }
  0xb4   : > { %v945_v19 = vpop.permute.xlu0 %944 }
  0xb5   : > { %v1067_v27 = vsel %vm611_vm2, %v1035_v11, %v945_v19  ;;  %v1634_v30 = vld [vmem:[#allocation2 + $0x1a8] sm:$0xff]  ;;  %492 = vrot.lane.b32.xlu1 %v3919_v18, %s3807_s20  ;;  %v4275_v19 = vld [vmem:[%s3853_s19 + $0x78] sm:$0xff] }
  0xb6   : > { %1100 = vst.msk [vmem:[#allocation2 + $0x128] sm:$0xff] %vm644_vm3, %v1067_v27  ;;  %3503 = vmatmul.mubr.msk.f32.gmra.mxu1 %vm644_vm3, %v1634_v30  ;;  %490 = vrot.lane.b32.xlu0 %v3905_v15, %s3807_s20  ;;  %v1053_v15 = vsel %vm578_vm1, %v3090_v38, %v853_v20 }
  0xb7   : > { %v819_v36 = vpop.permute.xlu1 %818 }
  0xb8   : > { %v979_v33 = vpop.permute.xlu0 %978  ;;  %v1036_v5 = vsel %vm578_vm1, %v4233_v46, %v819_v36 }
  0xb9   : > { %v1084_v3 = vsel %vm611_vm2, %v1052_v13, %v979_v33  ;;  %v1617_v43 = vld [vmem:[#allocation2 + $0x120] sm:$0xff]  ;;  %1266 = vrot.lane.b32.xlu1 %v3962_v31, %s3808_s21 }
  0xba   : > { %1117 = vst.msk [vmem:[#allocation2 + $0x1b0] sm:$0xff] %vm644_vm3, %v1084_v3  ;;  %3478 = vmatprep.mubr.msk.f32.mxu0 %vm644_vm3, %v1617_v43  ;;  %1264 = vrot.lane.b32.xlu0 %v3955_v29, %s3808_s21  ;;  %v4287_v33 = vld [vmem:[%s3853_s19 + $0x80] sm:$0xff] }
  0xbb   : > { %v821_v44 = vpop.permute.xlu1 %820 }
  0xbc   : > { %v981_v18 = vpop.permute.xlu0 %980 }
  0xbd   : > { %v1085_v49 = vsel %vm611_vm2, %v1053_v15, %v981_v18  ;;  %v1618_v51 = vld [vmem:[#allocation2 + $0x128] sm:$0xff]  ;;  %366 = vrot.lane.b32.xlu1 %v3927_v21, %s3808_s21  ;;  %v1037_v21 = vsel %vm578_vm1, %v4245_v57, %v821_v44  ;;  %v3093_v15 = vld [vmem:[%s3853_s19 + $0x150] sm:$0xff] }
  0xbe   : > { %1118 = vst.msk [vmem:[#allocation2 + $0x1b8] sm:$0xff] %vm644_vm3, %v1085_v49  ;;  %3479 = vmatmul.mubr.msk.f32.gmra.mxu0 %vm644_vm3, %v1618_v51  ;;  %1392 = vrot.lane.b32.xlu0 %v3968_v32, %s3807_s20 }
  0xbf   : > { %v855_v54 = vpop.permute.xlu1 %854 }
  0xc0   : > { %v947_v52 = vpop.permute.xlu0 %946 }
  0xc1   : > { %v1068_v59 = vsel %vm611_vm2, %v1036_v5, %v947_v52  ;;  %v1635_v60 = vld [vmem:[#allocation2 + $0x1b0] sm:$0xff]  ;;  %368 = vrot.lane.b32.xlu1 %v3934_v23, %s3808_s21  ;;  %v1054_v23 = vsel %vm578_vm1, %v3091_v61, %v855_v54  ;;  %v3094_v5 = vld [vmem:[%s3853_s19 + $0x158] sm:$0xff] }
  0xc2   : > { %1101 = vst.msk [vmem:[#allocation2 + $0x130] sm:$0xff] %vm644_vm3, %v1068_v59  ;;  %3505 = vmatprep.mubr.msk.f32.mxu1 %vm644_vm3, %v1635_v60  ;;  %1394 = vrot.lane.b32.xlu0 %v3975_v34, %s3807_s20  ;;  %v4317_v60 = vld [vmem:[%s3853_s19 + $0x90] sm:$0xff] }
  0xc3   : > { %v857_v8 = vpop.permute.xlu1 %856 }
  0xc4   : > { %v949_v6 = vpop.permute.xlu0 %948 }
  0xc5   : > { %v1069_v0 = vsel %vm611_vm2, %v1037_v21, %v949_v6  ;;  %v1636_v1 = vld [vmem:[#allocation2 + $0x1b8] sm:$0xff]  ;;  %496 = vrot.lane.b32.xlu1 %v3947_v26, %s3807_s20 }
  0xc6   : > { %1102 = vst.msk [vmem:[#allocation2 + $0x138] sm:$0xff] %vm644_vm3, %v1069_v0  ;;  %3506 = vmatmul.mubr.msk.f32.gmra.mxu1 %vm644_vm3, %v1636_v1  ;;  %494 = vrot.lane.b32.xlu0 %v3940_v24, %s3807_s20  ;;  %v1055_v24 = vsel %vm578_vm1, %v3092_v9, %v857_v8  ;;  %v4329_v1 = vld [vmem:[%s3853_s19 + $0x98] sm:$0xff] }
  0xc7   : > { %v823_v4 = vpop.permute.xlu1 %822 }
  0xc8   : > { %v983_v2 = vpop.permute.xlu0 %982  ;;  %v1038_v27 = vsel %vm578_vm1, %v4275_v19, %v823_v4 }
  0xc9   : > { %v1086_v12 = vsel %vm611_vm2, %v1054_v23, %v983_v2  ;;  %v1619_v16 = vld [vmem:[#allocation2 + $0x130] sm:$0xff]  ;;  %1270 = vrot.lane.b32.xlu1 %v3990_v39, %s3808_s21 }
  0xca   : > { %1119 = vst.msk [vmem:[#allocation2 + $0x1c0] sm:$0xff] %vm644_vm3, %v1086_v12  ;;  %3481 = vmatprep.mubr.msk.f32.mxu0 %vm644_vm3, %v1619_v16  ;;  %1268 = vrot.lane.b32.xlu0 %v3983_v37, %s3808_s21  ;;  %v3095_v12 = vld [vmem:[%s3853_s19 + $0x168] sm:$0xff] }
  0xcb   : > { %v825_v11 = vpop.permute.xlu1 %824 }
  0xcc   : > { %v985_v26 = vpop.permute.xlu0 %984 }
  0xcd   : > { %v1087_v20 = vsel %vm611_vm2, %v1055_v24, %v985_v26  ;;  %v1620_v25 = vld [vmem:[#allocation2 + $0x138] sm:$0xff]  ;;  %370 = vrot.lane.b32.xlu1 %v3955_v29, %s3808_s21  ;;  %v1039_v29 = vsel %vm578_vm1, %v4287_v33, %v825_v11 }
  0xce   : > { %1120 = vst.msk [vmem:[#allocation2 + $0x1c8] sm:$0xff] %vm644_vm3, %v1087_v20  ;;  %3482 = vmatmul.mubr.msk.f32.gmra.mxu0 %vm644_vm3, %v1620_v25  ;;  %1396 = vrot.lane.b32.xlu0 %v3996_v40, %s3807_s20  ;;  %v3096_v20 = vld [vmem:[%s3853_s19 + $0x170] sm:$0xff] }
  0xcf   : > { %v859_v13 = vpop.permute.xlu1 %858 }
  0xd0   : > { %v951_v30 = vpop.permute.xlu0 %950 }
  0xd1   : > { %v1070_v36 = vsel %vm611_vm2, %v1038_v27, %v951_v30  ;;  %v1637_v38 = vld [vmem:[#allocation2 + $0x1c0] sm:$0xff]  ;;  %372 = vrot.lane.b32.xlu1 %v3962_v31, %s3808_s21  ;;  %v1056_v31 = vsel %vm578_vm1, %v3093_v15, %v859_v13  ;;  %v4359_v13 = vld [vmem:[%s3853_s19 + $0xa8] sm:$0xff]  ;;  %v4371_v15 = vld [vmem:[%s3853_s19 + $0xb0] sm:$0xff] }
  0xd2   : > { %1103 = vst.msk [vmem:[#allocation2 + $0x140] sm:$0xff] %vm644_vm3, %v1070_v36  ;;  %3508 = vmatprep.mubr.msk.f32.mxu1 %vm644_vm3, %v1637_v38  ;;  %1398 = vrot.lane.b32.xlu0 %v4003_v42, %s3807_s20 }
  0xd3   : > { %v861_v43 = vpop.permute.xlu1 %860 }
  0xd4   : > { %v953_v3 = vpop.permute.xlu0 %952 }
  0xd5   : > { %v1071_v18 = vsel %vm611_vm2, %v1039_v29, %v953_v3  ;;  %v1638_v44 = vld [vmem:[#allocation2 + $0x1c8] sm:$0xff]  ;;  %500 = vrot.lane.b32.xlu1 %v3975_v34, %s3807_s20 }
  0xd6   : > { %1104 = vst.msk [vmem:[#allocation2 + $0x148] sm:$0xff] %vm644_vm3, %v1071_v18  ;;  %3509 = vmatmul.mubr.msk.f32.gmra.mxu1 %vm644_vm3, %v1638_v44  ;;  %498 = vrot.lane.b32.xlu0 %v3968_v32, %s3807_s20  ;;  %v1057_v32 = vsel %vm578_vm1, %v3094_v5, %v861_v43 }
  0xd7   : > { %v827_v51 = vpop.permute.xlu1 %826 }
  0xd8   : > { %v987_v49 = vpop.permute.xlu0 %986  ;;  %v1040_v8 = vsel %vm578_vm1, %v4317_v60, %v827_v51  ;;  %v3097_v51 = vld [vmem:[%s3853_s19 + $0x180] sm:$0xff] }
  0xd9   : > { %v1088_v52 = vsel %vm611_vm2, %v1056_v31, %v987_v49  ;;  %v1621_v54 = vld [vmem:[#allocation2 + $0x140] sm:$0xff]  ;;  %1274 = vrot.lane.b32.xlu1 %v4018_v47, %s3808_s21 }
  0xda   : > { %1121 = vst.msk [vmem:[#allocation2 + $0x1d0] sm:$0xff] %vm644_vm3, %v1088_v52  ;;  %3484 = vmatprep.mubr.msk.f32.mxu0 %vm644_vm3, %v1621_v54  ;;  %1272 = vrot.lane.b32.xlu0 %v4011_v45, %s3808_s21 }
  0xdb   : > { %v829_v59 = vpop.permute.xlu1 %828 }
  0xdc   : > { %v989_v34 = vpop.permute.xlu0 %988 }
  0xdd   : > { %v1089_v21 = vsel %vm611_vm2, %v1057_v32, %v989_v34  ;;  %v1622_v6 = vld [vmem:[#allocation2 + $0x148] sm:$0xff]  ;;  %374 = vrot.lane.b32.xlu1 %v3983_v37, %s3808_s21  ;;  %v1041_v37 = vsel %vm578_vm1, %v4329_v1, %v829_v59 }
  0xde   : > { %1122 = vst.msk [vmem:[#allocation2 + $0x1d8] sm:$0xff] %vm644_vm3, %v1089_v21  ;;  %3485 = vmatmul.mubr.msk.f32.gmra.mxu0 %vm644_vm3, %v1622_v6  ;;  %1400 = vrot.lane.b32.xlu0 %v4024_v48, %s3807_s20  ;;  %v3098_v34 = vld [vmem:[%s3853_s19 + $0x188] sm:$0xff] }
  0xdf   : > { %v863_v0 = vpop.permute.xlu1 %862 }
  0xe0   : > { %v955_v61 = vpop.permute.xlu0 %954 }
  0xe1   : > { %v1072_v23 = vsel %vm611_vm2, %v1040_v8, %v955_v61  ;;  %v1639_v2 = vld [vmem:[#allocation2 + $0x1d0] sm:$0xff]  ;;  %376 = vrot.lane.b32.xlu1 %v3990_v39, %s3808_s21  ;;  %v1058_v39 = vsel %vm578_vm1, %v3095_v12, %v863_v0  ;;  %v4401_v8 = vld [vmem:[%s3853_s19 + $0xc0] sm:$0xff] }
  0xe2   : > { %1105 = vst.msk [vmem:[#allocation2 + $0x150] sm:$0xff] %vm644_vm3, %v1072_v23  ;;  %3511 = vmatprep.mubr.msk.f32.mxu1 %vm644_vm3, %v1639_v2  ;;  %1402 = vrot.lane.b32.xlu0 %v4031_v50, %s3807_s20 }
  0xe3   : > { %v865_v9 = vpop.permute.xlu1 %864 }
  0xe4   : > { %v957_v4 = vpop.permute.xlu0 %956 }
  0xe5   : > { %v1073_v16 = vsel %vm611_vm2, %v1041_v37, %v957_v4  ;;  %v1640_v24 = vld [vmem:[#allocation2 + $0x1d8] sm:$0xff]  ;;  %504 = vrot.lane.b32.xlu1 %v4003_v42, %s3807_s20  ;;  %v4413_v4 = vld [vmem:[%s3853_s19 + $0xc8] sm:$0xff] }
  0xe6   : > { %1106 = vst.msk [vmem:[#allocation2 + $0x158] sm:$0xff] %vm644_vm3, %v1073_v16  ;;  %3512 = vmatmul.mubr.msk.f32.gmra.mxu1 %vm644_vm3, %v1640_v24  ;;  %502 = vrot.lane.b32.xlu0 %v3996_v40, %s3807_s20  ;;  %v1059_v40 = vsel %vm578_vm1, %v3096_v20, %v865_v9  ;;  %v227_v20 = vld [vmem:[%s3853_s19 + $0x8] sm:$0xff] }
  0xe7   : > { %v831_v11 = vpop.permute.xlu1 %830 }
  0xe8   : > { %v991_v26 = vpop.permute.xlu0 %990  ;;  %v1042_v29 = vsel %vm578_vm1, %v4359_v13, %v831_v11 }
  0xe9   : > { %v1090_v25 = vsel %vm611_vm2, %v1058_v39, %v991_v26  ;;  %v1623_v27 = vld [vmem:[#allocation2 + $0x150] sm:$0xff]  ;;  %1278 = vrot.lane.b32.xlu1 %v4046_v55, %s3808_s21  ;;  %v226_v39 = vld [vmem:[%s3853_s19] sm:$0xff] }
  0xea   : > { %1123 = vst.msk [vmem:[#allocation2 + $0x1e0] sm:$0xff] %vm644_vm3, %v1090_v25  ;;  %3487 = vmatprep.mubr.msk.f32.mxu0 %vm644_vm3, %v1623_v27  ;;  %1276 = vrot.lane.b32.xlu0 %v4039_v53, %s3808_s21 }
  0xeb   : > { %v833_v30 = vpop.permute.xlu1 %832 }
  0xec   : > { %v993_v42 = vpop.permute.xlu0 %992 }
  0xed   : > { %v1091_v36 = vsel %vm611_vm2, %v1059_v40, %v993_v42  ;;  %v1624_v38 = vld [vmem:[#allocation2 + $0x158] sm:$0xff]  ;;  %378 = vrot.lane.b32.xlu1 %v4011_v45, %s3808_s21  ;;  %v1043_v45 = vsel %vm578_vm1, %v4371_v15, %v833_v30  ;;  %v4436_v40 = vld [vmem:[%s3853_s19 + $0xe1] sm:$0xff] }
  0xee   : > { %1124 = vst.msk [vmem:[#allocation2 + $0x1e8] sm:$0xff] %vm644_vm3, %v1091_v36  ;;  %3488 = vmatmul.mubr.msk.f32.gmra.mxu0 %vm644_vm3, %v1624_v38  ;;  %1404 = vrot.lane.b32.xlu0 %v4052_v56, %s3807_s20 }
  0xef   : > { %v867_v43 = vpop.permute.xlu1 %866 }
  0xf0   : > { %v959_v3 = vpop.permute.xlu0 %958 }
  0xf1   : > { %v1074_v18 = vsel %vm611_vm2, %v1042_v29, %v959_v3  ;;  %v1641_v44 = vld [vmem:[#allocation2 + $0x1e0] sm:$0xff]  ;;  %380 = vrot.lane.b32.xlu1 %v4018_v47, %s3808_s21  ;;  %v1060_v47 = vsel %vm578_vm1, %v3097_v51, %v867_v43 }
  0xf2   : > { %1107 = vst.msk [vmem:[#allocation2 + $0x160] sm:$0xff] %vm644_vm3, %v1074_v18  ;;  %3514 = vmatprep.mubr.msk.f32.mxu1 %vm644_vm3, %v1641_v44  ;;  %1406 = vrot.lane.b32.xlu0 %v4059_v58, %s3807_s20  ;;  %v3242_v18 = vld [vmem:[%s3853_s19 + $0xe2] sm:$0xff] }
  0xf3   : > { %v869_v49 = vpop.permute.xlu1 %868 }
  0xf4   : > { %v961_v31 = vpop.permute.xlu0 %960 }
  0xf5   : > { %v1075_v5 = vsel %vm611_vm2, %v1043_v45, %v961_v31  ;;  %v1642_v52 = vld [vmem:[#allocation2 + $0x1e8] sm:$0xff]  ;;  %508 = vrot.lane.b32.xlu1 %v4031_v50, %s3807_s20 }
  0xf6   : > { %1108 = vst.msk [vmem:[#allocation2 + $0x168] sm:$0xff] %vm644_vm3, %v1075_v5  ;;  %3515 = vmatmul.mubr.msk.f32.gmra.mxu1 %vm644_vm3, %v1642_v52  ;;  %506 = vrot.lane.b32.xlu0 %v4024_v48, %s3807_s20  ;;  %v1061_v48 = vsel %vm578_vm1, %v3098_v34, %v869_v49 }
  0xf7   : > { %v835_v32 = vpop.permute.xlu1 %834 }
  0xf8   : > { %v995_v54 = vpop.permute.xlu0 %994  ;;  %v1044_v23 = vsel %vm578_vm1, %v4401_v8, %v835_v32  ;;  %v3211_v32 = vld [vmem:[%s3853_s19 + $0xf1] sm:$0xff] }
  0xf9   : > { %v1092_v59 = vsel %vm611_vm2, %v1060_v47, %v995_v54  ;;  %v1625_v21 = vld [vmem:[#allocation2 + $0x160] sm:$0xff]  ;;  %1282 = vrot.lane.b32.xlu1 %v4078_v7, %s3808_s21 }
  0xfa   : > { %1125 = vst.msk [vmem:[#allocation2 + $0x1f0] sm:$0xff] %vm644_vm3, %v1092_v59  ;;  %3490 = vmatprep.mubr.msk.f32.mxu0 %vm644_vm3, %v1625_v21  ;;  %1280 = vrot.lane.b32.xlu0 %v4068_v62, %s3808_s21  ;;  %v4477_v59 = vld [vmem:[%s3853_s19 + $0xf9] sm:$0xff] }
  0xfb   : > { %v837_v6 = vpop.permute.xlu1 %836 }
  0xfc   : > { %v997_v50 = vpop.permute.xlu0 %996 }
  0xfd   : > { %v1093_v61 = vsel %vm611_vm2, %v1061_v48, %v997_v50  ;;  %v1626_v0 = vld [vmem:[#allocation2 + $0x168] sm:$0xff]  ;;  %382 = vrot.lane.b32.xlu1 %v4039_v53, %s3808_s21  ;;  %v1045_v53 = vsel %vm578_vm1, %v4413_v4, %v837_v6 }
  0xfe   : > { %1126 = vst.msk [vmem:[#allocation2 + $0x1f8] sm:$0xff] %vm644_vm3, %v1093_v61  ;;  %3491 = vmatmul.mubr.msk.f32.gmra.mxu0 %vm644_vm3, %v1626_v0  ;;  %1408 = vrot.lane.b32.xlu0 %v4085_v14, %s3807_s20  ;;  %v3244_v0 = vld [vmem:[%s3853_s19 + $0xfa] sm:$0xff] }
  0xff   : > { %v355_v37 = vpop.permute.xlu1 %354 }
 0x100   : > { %v963_v2 = vpop.permute.xlu0 %962  ;;  %v579_v25 = vsel %vm578_vm1, %v226_v39, %v355_v37 }
 0x101   : > { %v1076_v9 = vsel %vm611_vm2, %v1044_v23, %v963_v2  ;;  %v1643_v12 = vld [vmem:[#allocation2 + $0x1f0] sm:$0xff]  ;;  %384 = vrot.lane.b32.xlu1 %v4046_v55, %s3808_s21  ;;  %v3209_v55 = vld [vmem:[%s3853_s19 + $0xd9] sm:$0xff] }
 0x102   : > { %1109 = vst.msk [vmem:[#allocation2 + $0x170] sm:$0xff] %vm644_vm3, %v1076_v9  ;;  %3517 = vmatprep.mubr.msk.f32.mxu1 %vm644_vm3, %v1643_v12  ;;  %1410 = vrot.lane.b32.xlu0 %v4099_v28, %s3807_s20 }
 0x103   : > { %v357_v24 = vpop.permute.xlu1 %356 }
 0x104   : > { %v965_v16 = vpop.permute.xlu0 %964  ;;  %v580_v42 = vsel %vm578_vm1, %v227_v20, %v357_v24 }
 0x105   : > { %v1077_v26 = vsel %vm611_vm2, %v1045_v53, %v965_v16  ;;  %v1644_v11 = vld [vmem:[#allocation2 + $0x1f8] sm:$0xff]  ;;  %512 = vrot.lane.b32.xlu1 %v4059_v58, %s3807_s20 }
 0x106   : > { %1110 = vst.msk [vmem:[#allocation2 + $0x178] sm:$0xff] %vm644_vm3, %v1077_v26  ;;  %3518 = vmatmul.mubr.msk.f32.gmra.mxu1 %vm644_vm3, %v1644_v11  ;;  %510 = vrot.lane.b32.xlu0 %v4052_v56, %s3807_s20  ;;  %v4448_v58 = vld [vmem:[%s3853_s19 + $0xda] sm:$0xff]  ;;  %v3213_v11 = vld [vmem:[%s3853_s19 + $0x109] sm:$0xff] }
 0x107   : > { %v485_v36 = vpop.permute.xlu1 %484 }
 0x108   : > { %v483_v27 = vpop.permute.xlu0 %482  ;;  %v613_v56 = vsel %vm611_vm2, %v580_v42, %v485_v36 }
 0x109   : > { %v612_v30 = vsel %vm611_vm2, %v579_v25, %v483_v27  ;;  %v1627_v38 = vld [vmem:[#allocation2 + $0x170] sm:$0xff]  ;;  %646 = vst.msk [vmem:[#allocation2 + $0x8] sm:$0xff] %vm644_vm3, %v613_v56  ;;  %1286 = vrot.lane.b32.xlu1 %v4436_v40, %s3808_s21 }
 0x10a   : > { %645 = vst.msk [vmem:[#allocation2] sm:$0xff] %vm644_vm3, %v612_v30  ;;  %3493 = vmatprep.mubr.msk.f32.mxu0 %vm644_vm3, %v1627_v38  ;;  %1284 = vrot.lane.b32.xlu0 %v3209_v55, %s3808_s21  ;;  %v4517_v25 = vld [vmem:[%s3853_s19 + $0x111] sm:$0xff] }
 0x10b   : > { %v1259_v3 = vpop.permute.xlu1 %1258 }
 0x10c   : > { %v1257_v29 = vpop.permute.xlu0 %1256 }
 0x10d   : > { %v1628_v43 = vld [vmem:[#allocation2 + $0x178] sm:$0xff]  ;;  %386 = vrot.lane.b32.xlu1 %v4068_v62, %s3808_s21  ;;  %v1480_v44 = vsel %vm578_vm1, %v4145_v17, %v1257_v29  ;;  %v1481_v62 = vsel %vm578_vm1, %v4161_v35, %v1259_v3 }
 0x10e   : > { %3494 = vmatmul.mubr.msk.f32.gmra.mxu0 %vm644_vm3, %v1628_v43  ;;  %1412 = vrot.lane.b32.xlu0 %v4448_v58, %s3807_s20 }
 0x10f   : > { %v359_v49 = vpop.permute.xlu1 %358 }
 0x110   : > { %v1385_v45 = vpop.permute.xlu0 %1384  ;;  %v1579_v5 = vld [vmem:[#allocation2 + $0x8] sm:$0xff] }
 0x111   : > { %v1512_v31 = vsel %vm611_vm2, %v1480_v44, %v1385_v45  ;;  %v1578_v51 = vld [vmem:[#allocation2] sm:$0xff]  ;;  %388 = vrot.lane.b32.xlu1 %v4078_v7, %s3808_s21  ;;  %v581_v7 = vsel %vm578_vm1, %v4090_v22, %v359_v49  ;;  %v4490_v22 = vld [vmem:[%s3853_s19 + $0xf2] sm:$0xff] }
 0x112   : > { %1545 = vst.msk [vmem:[#allocation2 + $0x200] sm:$0xff] %vm644_vm3, %v1512_v31  ;;  %1414 = vrot.lane.b32.xlu0 %v3242_v18, %s3807_s20  ;;  %3524 = vmatprep.mubr.msk.f32.mxu1 %vm644_vm3, %v1578_v51 }
 0x113   : > { %3525 = vmatmul.mubr.msk.f32.vlgmr.msra.gmra.mxu1 %vm644_vm3, %v1579_v5  ;;  %v361_v54 = vpop.permute.xlu1 %360 }
 0x114   : > { %v1387_v52 = vpop.permute.xlu0 %1386  ;;  %v582_v21 = vsel %vm578_vm1, %v4109_v41, %v361_v54  ;;  %v4557_v54 = vld [vmem:[%s3853_s19 + $0x129] sm:$0xff] }
 0x115   : > { %v1513_v47 = vsel %vm611_vm2, %v1481_v62, %v1387_v52  ;;  %516 = vrot.lane.b32.xlu1 %v4099_v28, %s3807_s20  ;;  %v3215_v62 = vld [vmem:[%s3853_s19 + $0x121] sm:$0xff] }
 0x116   : > { %1546 = vst.msk [vmem:[#allocation2 + $0x208] sm:$0xff] %vm644_vm3, %v1513_v47  ;;  %514 = vrot.lane.b32.xlu0 %v4085_v14, %s3807_s20 }
 0x117   : > { %v489_v50 = vpop.permute.xlu1 %488 }
 0x118   : > { %v487_v34 = vpop.permute.xlu0 %486  ;;  %v615_v14 = vsel %vm611_vm2, %v582_v21, %v489_v50 }
 0x119   : > { %v614_v48 = vsel %vm611_vm2, %v581_v7, %v487_v34  ;;  %v2299_v6 = vld [vmem:[#allocation2 + $0x200] sm:$0xff]  ;;  %648 = vst.msk [vmem:[#allocation2 + $0x18] sm:$0xff] %vm644_vm3, %v615_v14  ;;  %1290 = vrot.lane.b32.xlu1 %v4477_v59, %s3808_s21 }
 0x11a   : > { %647 = vst.msk [vmem:[#allocation2 + $0x10] sm:$0xff] %vm644_vm3, %v614_v48  ;;  %1288 = vrot.lane.b32.xlu0 %v3211_v32, %s3808_s21  ;;  %3576 = vmatprep.mubr.msk.f32.mxu0 %vm644_vm3, %v2299_v6  ;;  %v3248_v6 = vld [vmem:[%s3853_s19 + $0x12a] sm:$0xff] }
 0x11b   : > { %v1263_v41 = vpop.permute.xlu1 %1262 }
 0x11c   : > { %v1261_v28 = vpop.permute.xlu0 %1260  ;;  %v1483_v16 = vsel %vm578_vm1, %v4203_v10, %v1263_v41 }
 0x11d   : > { %v2300_v61 = vld [vmem:[#allocation2 + $0x208] sm:$0xff]  ;;  %390 = vrot.lane.b32.xlu1 %v3209_v55, %s3808_s21  ;;  %v1482_v23 = vsel %vm578_vm1, %v4191_v63, %v1261_v28 }
 0x11e   : > { %1416 = vrot.lane.b32.xlu0 %v4490_v22, %s3807_s20  ;;  %3577 = vmatmul.mubr.msk.f32.vlgmr.msra.gmra.mxu0 %vm644_vm3, %v2300_v61 }
 0x11f   : > { %v363_v9 = vpop.permute.xlu1 %362 }
 0x120   : > { %v1389_v2 = vpop.permute.xlu0 %1388  ;;  %v1581_v53 = vld [vmem:[#allocation2 + $0x18] sm:$0xff]  ;;  %v583_v20 = vsel %vm578_vm1, %v4145_v17, %v363_v9  ;;  %v4530_v17 = vld [vmem:[%s3853_s19 + $0x10a] sm:$0xff] }
 0x121   : > { %v1514_v37 = vsel %vm611_vm2, %v1482_v23, %v1389_v2  ;;  %v1580_v12 = vld [vmem:[#allocation2 + $0x10] sm:$0xff]  ;;  %392 = vrot.lane.b32.xlu1 %v4436_v40, %s3808_s21 }
 0x122   : > { %1547 = vst.msk [vmem:[#allocation2 + $0x210] sm:$0xff] %vm644_vm3, %v1514_v37  ;;  %1418 = vrot.lane.b32.xlu0 %v3244_v0, %s3807_s20  ;;  %3527 = vmatprep.mubr.msk.f32.mxu1 %vm644_vm3, %v1580_v12  ;;  %v3217_v12 = vld [vmem:[%s3853_s19 + $0x139] sm:$0xff] }
 0x123   : > { %3528 = vmatmul.mubr.msk.f32.gmra.mxu1 %vm644_vm3, %v1581_v53  ;;  %v365_v26 = vpop.permute.xlu1 %364 }
 0x124   : > { %v1391_v24 = vpop.permute.xlu0 %1390  ;;  %v584_v27 = vsel %vm578_vm1, %v4161_v35, %v365_v26 }
 0x125   : > { %v1515_v39 = vsel %vm611_vm2, %v1483_v16, %v1391_v24  ;;  %520 = vrot.lane.b32.xlu1 %v3242_v18, %s3807_s20  ;;  %v4597_v24 = vld [vmem:[%s3853_s19 + $0x141] sm:$0xff] }
 0x126   : > { %1548 = vst.msk [vmem:[#allocation2 + $0x218] sm:$0xff] %vm644_vm3, %v1515_v39  ;;  %518 = vrot.lane.b32.xlu0 %v4448_v58, %s3807_s20  ;;  %v3246_v58 = vld [vmem:[%s3853_s19 + $0x112] sm:$0xff] }
 0x127   : > { %v493_v42 = vpop.permute.xlu1 %492 }
 0x128   : > { %v491_v55 = vpop.permute.xlu0 %490  ;;  %v617_v36 = vsel %vm611_vm2, %v584_v27, %v493_v42 }
 0x129   : > { %v616_v40 = vsel %vm611_vm2, %v583_v20, %v491_v55  ;;  %v2301_v30 = vld [vmem:[#allocation2 + $0x210] sm:$0xff]  ;;  %650 = vst.msk [vmem:[#allocation2 + $0x28] sm:$0xff] %vm644_vm3, %v617_v36  ;;  %1294 = vrot.lane.b32.xlu1 %v4517_v25, %s3808_s21 }
 0x12a   : > { %649 = vst.msk [vmem:[#allocation2 + $0x20] sm:$0xff] %vm644_vm3, %v616_v40  ;;  %1292 = vrot.lane.b32.xlu0 %v3213_v11, %s3808_s21  ;;  %3579 = vmatprep.mubr.msk.f32.mxu0 %vm644_vm3, %v2301_v30  ;;  %v3250_v40 = vld [vmem:[%s3853_s19 + $0x142] sm:$0xff] }
 0x12b   : > { %v1267_v38 = vpop.permute.xlu1 %1266 }
 0x12c   : > { %v1265_v35 = vpop.permute.xlu0 %1264  ;;  %v1485_v31 = vsel %vm578_vm1, %v4245_v57, %v1267_v38 }
 0x12d   : > { %v2302_v56 = vld [vmem:[#allocation2 + $0x218] sm:$0xff]  ;;  %394 = vrot.lane.b32.xlu1 %v3211_v32, %s3808_s21  ;;  %v1484_v29 = vsel %vm578_vm1, %v4233_v46, %v1265_v35 }
 0x12e   : > { %1420 = vrot.lane.b32.xlu0 %v4530_v17, %s3807_s20  ;;  %3580 = vmatmul.mubr.msk.f32.gmra.mxu0 %vm644_vm3, %v2302_v56 }
 0x12f   : > { %v367_v18 = vpop.permute.xlu1 %366 }
 0x130   : > { %v1393_v3 = vpop.permute.xlu0 %1392  ;;  %v1583_v45 = vld [vmem:[#allocation2 + $0x28] sm:$0xff]  ;;  %v585_v52 = vsel %vm578_vm1, %v4191_v63, %v367_v18 }
 0x131   : > { %v1516_v43 = vsel %vm611_vm2, %v1484_v29, %v1393_v3  ;;  %v1582_v44 = vld [vmem:[#allocation2 + $0x20] sm:$0xff]  ;;  %396 = vrot.lane.b32.xlu1 %v4477_v59, %s3808_s21 }
 0x132   : > { %1549 = vst.msk [vmem:[#allocation2 + $0x220] sm:$0xff] %vm644_vm3, %v1516_v43  ;;  %1422 = vrot.lane.b32.xlu0 %v3246_v58, %s3807_s20  ;;  %3530 = vmatprep.mubr.msk.f32.mxu1 %vm644_vm3, %v1582_v44  ;;  %v4570_v63 = vld [vmem:[%s3853_s19 + $0x122] sm:$0xff]  ;;  %v3219_v43 = vld [vmem:[%s3853_s19 + $0x151] sm:$0xff] }
 0x133   : > { %3531 = vmatmul.mubr.msk.f32.gmra.mxu1 %vm644_vm3, %v1583_v45  ;;  %v369_v5 = vpop.permute.xlu1 %368  ;;  %v4637_v45 = vld [vmem:[%s3853_s19 + $0x159] sm:$0xff] }
 0x134   : > { %v1395_v49 = vpop.permute.xlu0 %1394  ;;  %v586_v32 = vsel %vm578_vm1, %v4203_v10, %v369_v5 }
 0x135   : > { %v1517_v51 = vsel %vm611_vm2, %v1485_v31, %v1395_v49  ;;  %524 = vrot.lane.b32.xlu1 %v3244_v0, %s3807_s20 }
 0x136   : > { %1550 = vst.msk [vmem:[#allocation2 + $0x228] sm:$0xff] %vm644_vm3, %v1517_v51  ;;  %522 = vrot.lane.b32.xlu0 %v4490_v22, %s3807_s20 }
 0x137   : > { %v497_v34 = vpop.permute.xlu1 %496 }
 0x138   : > { %v495_v47 = vpop.permute.xlu0 %494  ;;  %v619_v21 = vsel %vm611_vm2, %v586_v32, %v497_v34 }
 0x139   : > { %v618_v7 = vsel %vm611_vm2, %v585_v52, %v495_v47  ;;  %v2303_v59 = vld [vmem:[#allocation2 + $0x220] sm:$0xff]  ;;  %652 = vst.msk [vmem:[#allocation2 + $0x38] sm:$0xff] %vm644_vm3, %v619_v21  ;;  %1298 = vrot.lane.b32.xlu1 %v4557_v54, %s3808_s21 }
 0x13a   : > { %651 = vst.msk [vmem:[#allocation2 + $0x30] sm:$0xff] %vm644_vm3, %v618_v7  ;;  %1296 = vrot.lane.b32.xlu0 %v3215_v62, %s3808_s21  ;;  %3582 = vmatprep.mubr.msk.f32.mxu0 %vm644_vm3, %v2303_v59 }
 0x13b   : > { %v1271_v48 = vpop.permute.xlu1 %1270 }
 0x13c   : > { %v1269_v10 = vpop.permute.xlu0 %1268  ;;  %v1487_v23 = vsel %vm578_vm1, %v4287_v33, %v1271_v48 }
 0x13d   : > { %v2304_v50 = vld [vmem:[#allocation2 + $0x228] sm:$0xff]  ;;  %398 = vrot.lane.b32.xlu1 %v3213_v11, %s3808_s21  ;;  %v1486_v14 = vsel %vm578_vm1, %v4275_v19, %v1269_v10 }
 0x13e   : > { %1424 = vrot.lane.b32.xlu0 %v4570_v63, %s3807_s20  ;;  %3583 = vmatmul.mubr.msk.f32.gmra.mxu0 %vm644_vm3, %v2304_v50 }
 0x13f   : > { %v371_v41 = vpop.permute.xlu1 %370 }
 0x140   : > { %v1397_v22 = vpop.permute.xlu0 %1396  ;;  %v1585_v0 = vld [vmem:[#allocation2 + $0x38] sm:$0xff]  ;;  %v587_v53 = vsel %vm578_vm1, %v4233_v46, %v371_v41 }
 0x141   : > { %v1518_v28 = vsel %vm611_vm2, %v1486_v14, %v1397_v22  ;;  %v1584_v61 = vld [vmem:[#allocation2 + $0x30] sm:$0xff]  ;;  %400 = vrot.lane.b32.xlu1 %v4517_v25, %s3808_s21  ;;  %v4610_v46 = vld [vmem:[%s3853_s19 + $0x13a] sm:$0xff] }
 0x142   : > { %1551 = vst.msk [vmem:[#allocation2 + $0x230] sm:$0xff] %vm644_vm3, %v1518_v28  ;;  %1426 = vrot.lane.b32.xlu0 %v3248_v6, %s3807_s20  ;;  %3533 = vmatprep.mubr.msk.f32.mxu1 %vm644_vm3, %v1584_v61  ;;  %v3221_v14 = vld [vmem:[%s3853_s19 + $0x169] sm:$0xff]  ;;  %v4677_v41 = vld [vmem:[%s3853_s19 + $0x171] sm:$0xff] }
 0x143   : > { %3534 = vmatmul.mubr.msk.f32.gmra.mxu1 %vm644_vm3, %v1585_v0  ;;  %v373_v9 = vpop.permute.xlu1 %372 }
 0x144   : > { %v1399_v2 = vpop.permute.xlu0 %1398  ;;  %v588_v39 = vsel %vm578_vm1, %v4245_v57, %v373_v9 }
 0x145   : > { %v1519_v37 = vsel %vm611_vm2, %v1487_v23, %v1399_v2  ;;  %528 = vrot.lane.b32.xlu1 %v3246_v58, %s3807_s20 }
 0x146   : > { %1552 = vst.msk [vmem:[#allocation2 + $0x238] sm:$0xff] %vm644_vm3, %v1519_v37  ;;  %526 = vrot.lane.b32.xlu0 %v4530_v17, %s3807_s20 }
 0x147   : > { %v501_v11 = vpop.permute.xlu1 %500 }
 0x148   : > { %v499_v16 = vpop.permute.xlu0 %498  ;;  %v621_v55 = vsel %vm611_vm2, %v588_v39, %v501_v11 }
 0x149   : > { %v620_v26 = vsel %vm611_vm2, %v587_v53, %v499_v16  ;;  %v2305_v20 = vld [vmem:[#allocation2 + $0x230] sm:$0xff]  ;;  %654 = vst.msk [vmem:[#allocation2 + $0x48] sm:$0xff] %vm644_vm3, %v621_v55  ;;  %1302 = vrot.lane.b32.xlu1 %v4597_v24, %s3808_s21 }
 0x14a   : > { %653 = vst.msk [vmem:[#allocation2 + $0x40] sm:$0xff] %vm644_vm3, %v620_v26  ;;  %1300 = vrot.lane.b32.xlu0 %v3217_v12, %s3808_s21  ;;  %3585 = vmatprep.mubr.msk.f32.mxu0 %vm644_vm3, %v2305_v20  ;;  %v3254_v53 = vld [vmem:[%s3853_s19 + $0x172] sm:$0xff] }
 0x14b   : > { %v1275_v25 = vpop.permute.xlu1 %1274 }
 0x14c   : > { %v1273_v57 = vpop.permute.xlu0 %1272  ;;  %v1489_v56 = vsel %vm578_vm1, %v4329_v1, %v1275_v25 }
 0x14d   : > { %v2306_v27 = vld [vmem:[#allocation2 + $0x238] sm:$0xff]  ;;  %402 = vrot.lane.b32.xlu1 %v3215_v62, %s3808_s21  ;;  %v1488_v42 = vsel %vm578_vm1, %v4317_v60, %v1273_v57 }
 0x14e   : > { %1428 = vrot.lane.b32.xlu0 %v4610_v46, %s3807_s20  ;;  %3586 = vmatmul.mubr.msk.f32.gmra.mxu0 %vm644_vm3, %v2306_v27  ;;  %v3223_v27 = vld [vmem:[%s3853_s19 + $0x181] sm:$0xff] }
 0x14f   : > { %v375_v17 = vpop.permute.xlu1 %374 }
 0x150   : > { %v1401_v30 = vpop.permute.xlu0 %1400  ;;  %v1587_v38 = vld [vmem:[#allocation2 + $0x48] sm:$0xff]  ;;  %v589_v18 = vsel %vm578_vm1, %v4275_v19, %v375_v17  ;;  %v4650_v19 = vld [vmem:[%s3853_s19 + $0x152] sm:$0xff] }
 0x151   : > { %v1520_v36 = vsel %vm611_vm2, %v1488_v42, %v1401_v30  ;;  %v1586_v35 = vld [vmem:[#allocation2 + $0x40] sm:$0xff]  ;;  %404 = vrot.lane.b32.xlu1 %v4557_v54, %s3808_s21  ;;  %v3224_v30 = vld [vmem:[%s3853_s19 + $0x189] sm:$0xff] }
 0x152   : > { %1553 = vst.msk [vmem:[#allocation2 + $0x240] sm:$0xff] %vm644_vm3, %v1520_v36  ;;  %1430 = vrot.lane.b32.xlu0 %v3250_v40, %s3807_s20  ;;  %3536 = vmatprep.mubr.msk.f32.mxu1 %vm644_vm3, %v1586_v35  ;;  %v3252_v54 = vld [vmem:[%s3853_s19 + $0x15a] sm:$0xff] }
 0x153   : > { %3537 = vmatmul.mubr.msk.f32.gmra.mxu1 %vm644_vm3, %v1587_v38  ;;  %v377_v3 = vpop.permute.xlu1 %376 }
 0x154   : > { %v1403_v58 = vpop.permute.xlu0 %1402  ;;  %v590_v31 = vsel %vm578_vm1, %v4287_v33, %v377_v3 }
 0x155   : > { %v1521_v29 = vsel %vm611_vm2, %v1489_v56, %v1403_v58  ;;  %532 = vrot.lane.b32.xlu1 %v3248_v6, %s3807_s20  ;;  %v4728_v58 = vld [vmem:[%s3853_s19 + $0xd8] sm:$0xff] }
 0x156   : > { %1554 = vst.msk [vmem:[#allocation2 + $0x248] sm:$0xff] %vm644_vm3, %v1521_v29  ;;  %530 = vrot.lane.b32.xlu0 %v4570_v63, %s3807_s20 }
 0x157   : > { %v505_v51 = vpop.permute.xlu1 %504 }
 0x158   : > { %v503_v44 = vpop.permute.xlu0 %502  ;;  %v623_v62 = vsel %vm611_vm2, %v590_v31, %v505_v51 }
 0x159   : > { %v622_v49 = vsel %vm611_vm2, %v589_v18, %v503_v44  ;;  %v2307_v5 = vld [vmem:[#allocation2 + $0x240] sm:$0xff]  ;;  %656 = vst.msk [vmem:[#allocation2 + $0x58] sm:$0xff] %vm644_vm3, %v623_v62  ;;  %1306 = vrot.lane.b32.xlu1 %v4637_v45, %s3808_s21 }
 0x15a   : > { %655 = vst.msk [vmem:[#allocation2 + $0x50] sm:$0xff] %vm644_vm3, %v622_v49  ;;  %1304 = vrot.lane.b32.xlu0 %v3219_v43, %s3808_s21  ;;  %3588 = vmatprep.mubr.msk.f32.mxu0 %vm644_vm3, %v2307_v5 }
 0x15b   : > { %v1279_v52 = vpop.permute.xlu1 %1278 }
 0x15c   : > { %v1277_v33 = vpop.permute.xlu0 %1276  ;;  %v1491_v10 = vsel %vm578_vm1, %v4371_v15, %v1279_v52 }
 0x15d   : > { %v2308_v47 = vld [vmem:[#allocation2 + $0x248] sm:$0xff]  ;;  %406 = vrot.lane.b32.xlu1 %v3217_v12, %s3808_s21  ;;  %v1490_v32 = vsel %vm578_vm1, %v4359_v13, %v1277_v33 }
 0x15e   : > { %1432 = vrot.lane.b32.xlu0 %v4650_v19, %s3807_s20  ;;  %3589 = vmatmul.mubr.msk.f32.gmra.mxu0 %vm644_vm3, %v2308_v47  ;;  %v3225_v47 = vld [vmem:[%s3853_s19 + $0x199] sm:$0xff] }
 0x15f   : > { %v379_v59 = vpop.permute.xlu1 %378 }
 0x160   : > { %v1405_v7 = vpop.permute.xlu0 %1404  ;;  %v1589_v63 = vld [vmem:[#allocation2 + $0x58] sm:$0xff]  ;;  %v591_v22 = vsel %vm578_vm1, %v4317_v60, %v379_v59  ;;  %v4690_v60 = vld [vmem:[%s3853_s19 + $0x16a] sm:$0xff] }
 0x161   : > { %v1522_v34 = vsel %vm611_vm2, %v1490_v32, %v1405_v7  ;;  %v1588_v21 = vld [vmem:[#allocation2 + $0x50] sm:$0xff]  ;;  %408 = vrot.lane.b32.xlu1 %v4597_v24, %s3808_s21  ;;  %v3226_v7 = vld [vmem:[%s3853_s19 + $0x1a1] sm:$0xff] }
 0x162   : > { %1555 = vst.msk [vmem:[#allocation2 + $0x250] sm:$0xff] %vm644_vm3, %v1522_v34  ;;  %1434 = vrot.lane.b32.xlu0 %v3252_v54, %s3807_s20  ;;  %3539 = vmatprep.mubr.msk.f32.mxu1 %vm644_vm3, %v1588_v21 }
 0x163   : > { %3540 = vmatmul.mubr.msk.f32.gmra.mxu1 %vm644_vm3, %v1589_v63  ;;  %v381_v6 = vpop.permute.xlu1 %380 }
 0x164   : > { %v1407_v48 = vpop.permute.xlu0 %1406  ;;  %v592_v61 = vsel %vm578_vm1, %v4329_v1, %v381_v6 }
 0x165   : > { %v1523_v50 = vsel %vm611_vm2, %v1491_v10, %v1407_v48  ;;  %536 = vrot.lane.b32.xlu1 %v3250_v40, %s3807_s20 }
 0x166   : > { %1556 = vst.msk [vmem:[#allocation2 + $0x258] sm:$0xff] %vm644_vm3, %v1523_v50  ;;  %534 = vrot.lane.b32.xlu0 %v4610_v46, %s3807_s20  ;;  %v3179_v50 = vld [vmem:[%s3853_s19 + $0xf0] sm:$0xff] }
 0x167   : > { %v509_v23 = vpop.permute.xlu1 %508 }
 0x168   : > { %v507_v28 = vpop.permute.xlu0 %506  ;;  %v625_v37 = vsel %vm611_vm2, %v592_v61, %v509_v23 }
 0x169   : > { %v624_v0 = vsel %vm611_vm2, %v591_v22, %v507_v28  ;;  %v2309_v2 = vld [vmem:[#allocation2 + $0x250] sm:$0xff]  ;;  %658 = vst.msk [vmem:[#allocation2 + $0x68] sm:$0xff] %vm644_vm3, %v625_v37  ;;  %1310 = vrot.lane.b32.xlu1 %v4677_v41, %s3808_s21 }
 0x16a   : > { %657 = vst.msk [vmem:[#allocation2 + $0x60] sm:$0xff] %vm644_vm3, %v624_v0  ;;  %1308 = vrot.lane.b32.xlu0 %v3221_v14, %s3808_s21  ;;  %3591 = vmatprep.mubr.msk.f32.mxu0 %vm644_vm3, %v2309_v2 }
 0x16b   : > { %v1283_v9 = vpop.permute.xlu1 %1282 }
 0x16c   : > { %v1281_v1 = vpop.permute.xlu0 %1280  ;;  %v1493_v55 = vsel %vm578_vm1, %v4413_v4, %v1283_v9 }
 0x16d   : > { %v2310_v12 = vld [vmem:[#allocation2 + $0x258] sm:$0xff]  ;;  %410 = vrot.lane.b32.xlu1 %v3219_v43, %s3808_s21  ;;  %v1492_v16 = vsel %vm578_vm1, %v4401_v8, %v1281_v1  ;;  %v3256_v43 = vld [vmem:[%s3853_s19 + $0x18a] sm:$0xff] }
 0x16e   : > { %1436 = vrot.lane.b32.xlu0 %v4690_v60, %s3807_s20  ;;  %3592 = vmatmul.mubr.msk.f32.gmra.mxu0 %vm644_vm3, %v2310_v12 }
 0x16f   : > { %v383_v26 = vpop.permute.xlu1 %382 }
 0x170   : > { %v1409_v24 = vpop.permute.xlu0 %1408  ;;  %v1591_v20 = vld [vmem:[#allocation2 + $0x68] sm:$0xff]  ;;  %v593_v40 = vsel %vm578_vm1, %v4359_v13, %v383_v26 }
 0x171   : > { %v1524_v39 = vsel %vm611_vm2, %v1492_v16, %v1409_v24  ;;  %v1590_v11 = vld [vmem:[#allocation2 + $0x60] sm:$0xff]  ;;  %412 = vrot.lane.b32.xlu1 %v4637_v45, %s3808_s21 }
 0x172   : > { %1557 = vst.msk [vmem:[#allocation2 + $0x260] sm:$0xff] %vm644_vm3, %v1524_v39  ;;  %1438 = vrot.lane.b32.xlu0 %v3254_v53, %s3807_s20  ;;  %3542 = vmatprep.mubr.msk.f32.mxu1 %vm644_vm3, %v1590_v11  ;;  %v3255_v13 = vld [vmem:[%s3853_s19 + $0x182] sm:$0xff] }
 0x173   : > { %3543 = vmatmul.mubr.msk.f32.gmra.mxu1 %vm644_vm3, %v1591_v20  ;;  %v385_v25 = vpop.permute.xlu1 %384  ;;  %v3178_v45 = vld [vmem:[%s3853_s19 + $0xe0] sm:$0xff] }
 0x174   : > { %v1411_v46 = vpop.permute.xlu0 %1410  ;;  %v594_v36 = vsel %vm578_vm1, %v4371_v15, %v385_v25 }
 0x175   : > { %v1525_v57 = vsel %vm611_vm2, %v1493_v55, %v1411_v46  ;;  %540 = vrot.lane.b32.xlu1 %v3252_v54, %s3807_s20  ;;  %v3181_v55 = vld [vmem:[%s3853_s19 + $0x108] sm:$0xff] }
 0x176   : > { %1558 = vst.msk [vmem:[#allocation2 + $0x268] sm:$0xff] %vm644_vm3, %v1525_v57  ;;  %538 = vrot.lane.b32.xlu0 %v4650_v19, %s3807_s20 }
 0x177   : > { %v513_v35 = vpop.permute.xlu1 %512 }
 0x178   : > { %v511_v42 = vpop.permute.xlu0 %510  ;;  %v627_v56 = vsel %vm611_vm2, %v594_v36, %v513_v35 }
 0x179   : > { %v626_v17 = vsel %vm611_vm2, %v593_v40, %v511_v42  ;;  %v2311_v38 = vld [vmem:[#allocation2 + $0x260] sm:$0xff]  ;;  %660 = vst.msk [vmem:[#allocation2 + $0x78] sm:$0xff] %vm644_vm3, %v627_v56  ;;  %1314 = vrot.lane.b32.xlu1 %v3224_v30, %s3808_s21  ;;  %v3182_v40 = vld [vmem:[%s3853_s19 + $0x110] sm:$0xff] }
 0x17a   : > { %659 = vst.msk [vmem:[#allocation2 + $0x70] sm:$0xff] %vm644_vm3, %v626_v17  ;;  %1312 = vrot.lane.b32.xlu0 %v3223_v27, %s3808_s21  ;;  %3594 = vmatprep.mubr.msk.f32.mxu0 %vm644_vm3, %v2311_v38 }
 0x17b   : > { %v1287_v29 = vpop.permute.xlu1 %1286 }
 0x17c   : > { %v1285_v15 = vpop.permute.xlu0 %1284  ;;  %v1495_v62 = vsel %vm578_vm1, %v3178_v45, %v1287_v29 }
 0x17d   : > { %v2312_v3 = vld [vmem:[#allocation2 + $0x268] sm:$0xff]  ;;  %414 = vrot.lane.b32.xlu1 %v3221_v14, %s3808_s21  ;;  %v1494_v18 = vsel %vm578_vm1, %v4728_v58, %v1285_v15  ;;  %v4797_v15 = vpop.f32.mrf.mxu1 }
 0x17e   : > { %1440 = vrot.lane.b32.xlu0 %v3255_v13, %s3807_s20  ;;  %3595 = vmatmul.mubr.msk.f32.gmra.mxu0 %vm644_vm3, %v2312_v3 }
 0x17f   : > { %v387_v49 = vpop.permute.xlu1 %386 }
 0x180   : > { %v1413_v44 = vpop.permute.xlu0 %1412  ;;  %v1593_v5 = vld [vmem:[#allocation2 + $0x78] sm:$0xff]  ;;  %v595_v54 = vsel %vm578_vm1, %v4401_v8, %v387_v49 }
 0x181   : > { %v1526_v31 = vsel %vm611_vm2, %v1494_v18, %v1413_v44  ;;  %v1592_v51 = vld [vmem:[#allocation2 + $0x70] sm:$0xff]  ;;  %416 = vrot.lane.b32.xlu1 %v4677_v41, %s3808_s21  ;;  %v3257_v8 = vld [vmem:[%s3853_s19 + $0x19a] sm:$0xff] }
 0x182   : > { %1559 = vst.msk [vmem:[#allocation2 + $0x270] sm:$0xff] %vm644_vm3, %v1526_v31  ;;  %1442 = vrot.lane.b32.xlu0 %v3256_v43, %s3807_s20  ;;  %3545 = vmatprep.mubr.msk.f32.mxu1 %vm644_vm3, %v1592_v51  ;;  %v3180_v41 = vld [vmem:[%s3853_s19 + $0xf8] sm:$0xff]  ;;  %v4806_v31 = vpop.f32.mrf.mxu1  ;;  %v4808_v51 = vpop.f32.mrf.mxu0 }
 0x183   : > { %3546 = vmatmul.mubr.msk.f32.gmra.mxu1 %vm644_vm3, %v1593_v5  ;;  %v389_v52 = vpop.permute.xlu1 %388  ;;  %v4811_v5 = vld [vmem:[%s3853_s19 + $0x120] sm:$0xff] }
 0x184   : > { %v1415_v19 = vpop.permute.xlu0 %1414  ;;  %v596_v34 = vsel %vm578_vm1, %v4413_v4, %v389_v52  ;;  %v3258_v4 = vld [vmem:[%s3853_s19 + $0x1a2] sm:$0xff] }
 0x185   : > { %v1527_v33 = vsel %vm611_vm2, %v1495_v62, %v1415_v19  ;;  %544 = vrot.lane.b32.xlu1 %v3254_v53, %s3807_s20 }
 0x186   : > { %1560 = vst.msk [vmem:[#allocation2 + $0x278] sm:$0xff] %vm644_vm3, %v1527_v33  ;;  %542 = vrot.lane.b32.xlu0 %v4690_v60, %s3807_s20  ;;  %v4813_v33 = vpop.f32.mrf.mxu1 }
 0x187   : > { %v517_v21 = vpop.permute.xlu1 %516 }
 0x188   : > { %v515_v32 = vpop.permute.xlu0 %514  ;;  %v629_v10 = vsel %vm611_vm2, %v596_v34, %v517_v21  ;;  %v4822_v21 = vpop.f32.mrf.mxu1 }
 0x189   : > { %v628_v59 = vsel %vm611_vm2, %v595_v54, %v515_v32  ;;  %v2313_v63 = vld [vmem:[#allocation2 + $0x270] sm:$0xff]  ;;  %662 = vst.msk [vmem:[#allocation2 + $0x88] sm:$0xff] %vm644_vm3, %v629_v10  ;;  %1318 = vrot.lane.b32.xlu1 %v3226_v7, %s3808_s21  ;;  %v4818_v54 = vpop.f32.mrf.mxu0  ;;  %v3184_v32 = vld [vmem:[%s3853_s19 + $0x128] sm:$0xff] }
 0x18a   : > { %661 = vst.msk [vmem:[#allocation2 + $0x80] sm:$0xff] %vm644_vm3, %v628_v59  ;;  %1316 = vrot.lane.b32.xlu0 %v3225_v47, %s3808_s21  ;;  %3597 = vmatprep.mubr.msk.f32.mxu0 %vm644_vm3, %v2313_v63 }
 0x18b   : > { %v1291_v6 = vpop.permute.xlu1 %1290  ;;  %v4826_v10 = vpop.f32.mrf.mxu0 }
 0x18c   : > { %v1289_v48 = vpop.permute.xlu0 %1288  ;;  %v1497_v37 = vsel %vm578_vm1, %v3180_v41, %v1291_v6 }
 0x18d   : > { %v2314_v14 = vld [vmem:[#allocation2 + $0x278] sm:$0xff]  ;;  %1446 = vrot.lane.b32.xlu1 %v3258_v4, %s3807_s20  ;;  %v1496_v22 = vsel %vm578_vm1, %v3179_v50, %v1289_v48 }
 0x18e   : > { %1444 = vrot.lane.b32.xlu0 %v3257_v8, %s3807_s20  ;;  %3598 = vmatmul.mubr.msk.f32.gmra.mxu0 %vm644_vm3, %v2314_v14  ;;  %v4829_v8 = vpop.f32.mrf.mxu1  ;;  %v4834_v14 = vpop.f32.mrf.mxu0 }
 0x18f   : > { %v391_v0 = vpop.permute.xlu1 %390 }
 0x190   : > { %v1417_v28 = vpop.permute.xlu0 %1416  ;;  %v1595_v2 = vld [vmem:[#allocation2 + $0x88] sm:$0xff]  ;;  %v597_v12 = vsel %vm578_vm1, %v4728_v58, %v391_v0 }
 0x191   : > { %v1528_v61 = vsel %vm611_vm2, %v1496_v22, %v1417_v28  ;;  %v1594_v23 = vld [vmem:[#allocation2 + $0x80] sm:$0xff]  ;;  %v4836_v22 = vpop.f32.mrf.mxu1 }
 0x192   : > { %1561 = vst.msk [vmem:[#allocation2 + $0x280] sm:$0xff] %vm644_vm3, %v1528_v61  ;;  %3548 = vmatprep.mubr.msk.f32.mxu1 %vm644_vm3, %v1594_v23  ;;  %v4839_v61 = vpop.f32.mrf.mxu0 }
 0x193   : > { %3549 = vmatmul.mubr.msk.f32.gmra.mxu1 %vm644_vm3, %v1595_v2  ;;  %v393_v9 = vpop.permute.xlu1 %392 }
 0x194   : > { %v1419_v60 = vpop.permute.xlu0 %1418  ;;  %v598_v16 = vsel %vm578_vm1, %v3178_v45, %v393_v9 }
 0x195   : > { %v1529_v1 = vsel %vm611_vm2, %v1497_v37, %v1419_v60  ;;  %v4843_v60 = vpop.f32.mrf.mxu1 }
 0x196   : > { %1562 = vst.msk [vmem:[#allocation2 + $0x288] sm:$0xff] %vm644_vm3, %v1529_v1 }
 0x197   : > { %v521_v39 = vpop.permute.xlu1 %520 }
 0x198   : > { %v519_v53 = vpop.permute.xlu0 %518  ;;  %v631_v11 = vsel %vm611_vm2, %v598_v16, %v521_v39  ;;  %v4854_v39 = vpop.f32.mrf.mxu1 }
 0x199   : > { %v630_v24 = vsel %vm611_vm2, %v597_v12, %v519_v53  ;;  %v2315_v26 = vld [vmem:[#allocation2 + $0x280] sm:$0xff]  ;;  %664 = vst.msk [vmem:[#allocation2 + $0x98] sm:$0xff] %vm644_vm3, %v631_v11  ;;  %v4849_v12 = vpop.f32.mrf.mxu0  ;;  %v4852_v53 = vld [vmem:[%s3853_s19 + $0x138] sm:$0xff] }
 0x19a   : > { %663 = vst.msk [vmem:[#allocation2 + $0x90] sm:$0xff] %vm644_vm3, %v630_v24  ;;  %3600 = vmatprep.mubr.msk.f32.mxu0 %vm644_vm3, %v2315_v26  ;;  %v4859_v11 = vpop.f32.mrf.mxu1 }
 0x19b   : > { %v1295_v46 = vpop.permute.xlu1 %1294  ;;  %v4857_v26 = vpop.f32.mrf.mxu0 }
 0x19c   : > { %v1293_v20 = vpop.permute.xlu0 %1292  ;;  %v1499_v35 = vsel %vm578_vm1, %v3182_v40, %v1295_v46  ;;  %v3186_v46 = vld [vmem:[%s3853_s19 + $0x140] sm:$0xff] }
 0x19d   : > { %v2316_v57 = vld [vmem:[#allocation2 + $0x288] sm:$0xff]  ;;  %v1498_v25 = vsel %vm578_vm1, %v3181_v55, %v1293_v20 }
 0x19e   : > { %3601 = vmatmul.mubr.msk.f32.gmra.mxu0 %vm644_vm3, %v2316_v57 }
 0x19f   : > { %v395_v30 = vpop.permute.xlu1 %394 }
 0x1a0   : > { %v1421_v27 = vpop.permute.xlu0 %1420  ;;  %v1597_v17 = vld [vmem:[#allocation2 + $0x98] sm:$0xff]  ;;  %v599_v58 = vsel %vm578_vm1, %v3179_v50, %v395_v30  ;;  %v4870_v30 = vpop.f32.mrf.mxu1 }
 0x1a1   : > { %v1530_v42 = vsel %vm611_vm2, %v1498_v25, %v1421_v27  ;;  %v1596_v36 = vld [vmem:[#allocation2 + $0x90] sm:$0xff] }
 0x1a2   : > { %1563 = vst.msk [vmem:[#allocation2 + $0x290] sm:$0xff] %vm644_vm3, %v1530_v42  ;;  %3551 = vmatprep.mubr.msk.f32.mxu1 %vm644_vm3, %v1596_v36  ;;  %v4867_v42 = vpop.f32.mrf.mxu0 }
 0x1a3   : > { %3552 = vmatmul.mubr.msk.f32.gmra.mxu1 %vm644_vm3, %v1597_v17  ;;  %v397_v13 = vpop.permute.xlu1 %396 }
 0x1a4   : > { %v1423_v38 = vpop.permute.xlu0 %1422  ;;  %v600_v3 = vsel %vm578_vm1, %v3180_v41, %v397_v13 }
 0x1a5   : > { %v1531_v56 = vsel %vm611_vm2, %v1499_v35, %v1423_v38  ;;  %v4873_v35 = vpop.f32.mrf.mxu0 }
 0x1a6   : > { %1564 = vst.msk [vmem:[#allocation2 + $0x298] sm:$0xff] %vm644_vm3, %v1531_v56  ;;  %v4876_v13 = vpop.f32.mrf.mxu1 }
 0x1a7   : > { %v525_v18 = vpop.permute.xlu1 %524 }
 0x1a8   : > { %v523_v29 = vpop.permute.xlu0 %522  ;;  %v633_v45 = vsel %vm611_vm2, %v600_v3, %v525_v18  ;;  %v4881_v3 = vpop.f32.mrf.mxu0 }
 0x1a9   : > { %v632_v43 = vsel %vm611_vm2, %v599_v58, %v523_v29  ;;  %v2317_v44 = vld [vmem:[#allocation2 + $0x290] sm:$0xff]  ;;  %666 = vst.msk [vmem:[#allocation2 + $0xa8] sm:$0xff] %vm644_vm3, %v633_v45 }
 0x1aa   : > { %665 = vst.msk [vmem:[#allocation2 + $0xa0] sm:$0xff] %vm644_vm3, %v632_v43  ;;  %3603 = vmatprep.mubr.msk.f32.mxu0 %vm644_vm3, %v2317_v44 }
 0x1ab   : > { %v1299_v62 = vpop.permute.xlu1 %1298 }
 0x1ac   : > { %v1297_v49 = vpop.permute.xlu0 %1296  ;;  %v1501_v48 = vsel %vm578_vm1, %v3184_v32, %v1299_v62 }
 0x1ad   : > { %v2318_v19 = vld [vmem:[#allocation2 + $0x298] sm:$0xff]  ;;  %v1500_v52 = vsel %vm578_vm1, %v4811_v5, %v1297_v49  ;;  %v4885_v49 = vpop.f32.mrf.mxu1 }
 0x1ae   : > { %3604 = vmatmul.mubr.msk.f32.gmra.mxu0 %vm644_vm3, %v2318_v19  ;;  %v4890_v19 = vpop.f32.mrf.mxu0 }
 0x1af   : > { %v399_v34 = vpop.permute.xlu1 %398 }
 0x1b0   : > { %v1425_v47 = vpop.permute.xlu0 %1424  ;;  %v1599_v63 = vld [vmem:[#allocation2 + $0xa8] sm:$0xff]  ;;  %v601_v28 = vsel %vm578_vm1, %v3181_v55, %v399_v34  ;;  %v4899_v34 = vpop.f32.mrf.mxu0 }
 0x1b1   : > { %v1532_v7 = vsel %vm611_vm2, %v1500_v52, %v1425_v47  ;;  %v1598_v59 = vld [vmem:[#allocation2 + $0xa0] sm:$0xff]  ;;  %v4896_v47 = vld [vmem:[%s3853_s19 + $0x150] sm:$0xff] }
 0x1b2   : > { %1565 = vst.msk [vmem:[#allocation2 + $0x2a0] sm:$0xff] %vm644_vm3, %v1532_v7  ;;  %3554 = vmatprep.mubr.msk.f32.mxu1 %vm644_vm3, %v1598_v59 }
 0x1b3   : > { %3555 = vmatmul.mubr.msk.f32.gmra.mxu1 %vm644_vm3, %v1599_v63  ;;  %v401_v6 = vpop.permute.xlu1 %400 }
 0x1b4   : > { %v1427_v4 = vpop.permute.xlu0 %1426  ;;  %v602_v0 = vsel %vm578_vm1, %v3182_v40, %v401_v6 }
 0x1b5   : > { %v1533_v50 = vsel %vm611_vm2, %v1501_v48, %v1427_v4 }
 0x1b6   : > { %1566 = vst.msk [vmem:[#allocation2 + $0x2a8] sm:$0xff] %vm644_vm3, %v1533_v50  ;;  %v4908_v50 = vld [vmem:[%s3853_s19 + $0x158] sm:$0xff] }
 0x1b7   : > { %v529_v2 = vpop.permute.xlu1 %528 }
 0x1b8   : > { %v527_v41 = vpop.permute.xlu0 %526  ;;  %v635_v1 = vsel %vm611_vm2, %v602_v0, %v529_v2 }
 0x1b9   : > { %v634_v23 = vsel %vm611_vm2, %v601_v28, %v527_v41  ;;  %v2319_v37 = vld [vmem:[#allocation2 + $0x2a0] sm:$0xff]  ;;  %668 = vst.msk [vmem:[#allocation2 + $0xb8] sm:$0xff] %vm644_vm3, %v635_v1 }
 0x1ba   : > { %667 = vst.msk [vmem:[#allocation2 + $0xb0] sm:$0xff] %vm644_vm3, %v634_v23  ;;  %3606 = vmatprep.mubr.msk.f32.mxu0 %vm644_vm3, %v2319_v37 }
 0x1bb   : > { %v1303_v16 = vpop.permute.xlu1 %1302 }
 0x1bc   : > { %v1301_v9 = vpop.permute.xlu0 %1300  ;;  %v1503_v36 = vsel %vm578_vm1, %v3186_v46, %v1303_v16 }
 0x1bd   : > { %v2320_v24 = vld [vmem:[#allocation2 + $0x2a8] sm:$0xff]  ;;  %v1502_v20 = vsel %vm578_vm1, %v4852_v53, %v1301_v9 }
 0x1be   : > { %3607 = vmatmul.mubr.msk.f32.gmra.mxu0 %vm644_vm3, %v2320_v24  ;;  %v4905_v4 = vpop.f32.mrf.mxu0 }
 0x1bf   : > { %v403_v25 = vpop.permute.xlu1 %402 }
 0x1c0   : > { %v1429_v55 = vpop.permute.xlu0 %1428  ;;  %v1601_v40 = vld [vmem:[#allocation2 + $0xb8] sm:$0xff]  ;;  %v603_v58 = vsel %vm578_vm1, %v4811_v5, %v403_v25  ;;  %v4893_v5 = vpop.f32.mrf.mxu1 }
 0x1c1   : > { %v1534_v57 = vsel %vm611_vm2, %v1502_v20, %v1429_v55  ;;  %v1600_v27 = vld [vmem:[#allocation2 + $0xb0] sm:$0xff]  ;;  %v4918_v1 = vpop.f32.mrf.mxu0 }
 0x1c2   : > { %1567 = vst.msk [vmem:[#allocation2 + $0x2b0] sm:$0xff] %vm644_vm3, %v1534_v57  ;;  %3557 = vmatprep.mubr.msk.f32.mxu1 %vm644_vm3, %v1600_v27  ;;  %v4901_v59 = vpop.f32.mrf.mxu1 }
 0x1c3   : > { %3558 = vmatmul.mubr.msk.f32.gmra.mxu1 %vm644_vm3, %v1601_v40  ;;  %v405_v56 = vpop.permute.xlu1 %404 }
 0x1c4   : > { %v1431_v17 = vpop.permute.xlu0 %1430  ;;  %v604_v43 = vsel %vm578_vm1, %v3184_v32, %v405_v56 }
 0x1c5   : > { %v1535_v38 = vsel %vm611_vm2, %v1503_v36, %v1431_v17 }
 0x1c6   : > { %1568 = vst.msk [vmem:[#allocation2 + $0x2b8] sm:$0xff] %vm644_vm3, %v1535_v38  ;;  %v4911_v0 = vpop.f32.mrf.mxu1 }
 0x1c7   : > { %v533_v44 = vpop.permute.xlu1 %532 }
 0x1c8   : > { %v531_v29 = vpop.permute.xlu0 %530  ;;  %v637_v62 = vsel %vm611_vm2, %v604_v43, %v533_v44  ;;  %v4921_v24 = vpop.f32.mrf.mxu1  ;;  %v4943_v44 = vld [vmem:[%s5205_s2] ss:$0 sm:$0xff] }
 0x1c9   : > { %v636_v18 = vsel %vm611_vm2, %v603_v58, %v531_v29  ;;  %v2321_v45 = vld [vmem:[#allocation2 + $0x2b0] sm:$0xff]  ;;  %670 = vst.msk [vmem:[#allocation2 + $0xc8] sm:$0xff] %vm644_vm3, %v637_v62 }
 0x1ca   : > { %669 = vst.msk [vmem:[#allocation2 + $0xc0] sm:$0xff] %vm644_vm3, %v636_v18  ;;  %3609 = vmatprep.mubr.msk.f32.mxu0 %vm644_vm3, %v2321_v45 }
 0x1cb   : > { %v1307_v32 = vpop.permute.xlu1 %1306 }
 0x1cc   : > { %v1305_v52 = vpop.permute.xlu0 %1304  ;;  %v1505_v2 = vsel %vm578_vm1, %v4908_v50, %v1307_v32 }
 0x1cd   : > { %v2322_v7 = vld [vmem:[#allocation2 + $0x2b8] sm:$0xff]  ;;  %v1504_v63 = vsel %vm578_vm1, %v4896_v47, %v1305_v52 }
 0x1ce   : > { %3610 = vmatmul.mubr.msk.f32.gmra.mxu0 %vm644_vm3, %v2322_v7  ;;  %v4924_v20 = vpop.f32.mrf.mxu0 }
 0x1cf   : > { %v407_v28 = vpop.permute.xlu1 %406 }
 0x1d0   : > { %v1433_v48 = vpop.permute.xlu0 %1432  ;;  %v1603_v23 = vld [vmem:[#allocation2 + $0xc8] sm:$0xff]  ;;  %v605_v55 = vsel %vm578_vm1, %v4852_v53, %v407_v28  ;;  %v4933_v56 = vpop.f32.mrf.mxu0 }
 0x1d1   : > { %v1536_v6 = vsel %vm611_vm2, %v1504_v63, %v1433_v48  ;;  %v1602_v41 = vld [vmem:[#allocation2 + $0xc0] sm:$0xff]  ;;  %v4950_v63 = vld [vmem:[%s3853_s19 + $0x170] sm:$0xff] }
 0x1d2   : > { %1569 = vst.msk [vmem:[#allocation2 + $0x2c0] sm:$0xff] %vm644_vm3, %v1536_v6  ;;  %3560 = vmatprep.mubr.msk.f32.mxu1 %vm644_vm3, %v1602_v41 }
 0x1d3   : > { %3561 = vmatmul.mubr.msk.f32.gmra.mxu1 %vm644_vm3, %v1603_v23  ;;  %v409_v16 = vpop.permute.xlu1 %408  ;;  %v3526_v57 = vpop.f32.mrf.mxu1 }
 0x1d4   : > { %v1435_v37 = vpop.permute.xlu0 %1434  ;;  %v606_v27 = vsel %vm578_vm1, %v3186_v46, %v409_v16  ;;  %v2145_v29 = vadd.f32 %v3526_v57, %v4808_v51  ;;  %v4938_v46 = vld [vmem:[%s3853_s19 + $0x168] sm:$0xff] }
 0x1d5   : > { %v1537_v9 = vsel %vm611_vm2, %v1505_v2, %v1435_v37  ;;  %v2139_v53 = vpop.f32.mrf.mxu1 }
 0x1d6   : > { %1570 = vst.msk [vmem:[#allocation2 + $0x2c8] sm:$0xff] %vm644_vm3, %v1537_v9  ;;  %v2140_v62 = vadd.f32 %v2139_v53, %v4818_v54 }
 0x1d7   : > { %v537_v36 = vpop.permute.xlu1 %536 }
 0x1d8   : > { %v535_v25 = vpop.permute.xlu0 %534  ;;  %v639_v38 = vsel %vm611_vm2, %v606_v27, %v537_v36 }
 0x1d9   : > { %v638_v40 = vsel %vm611_vm2, %v605_v55, %v535_v25  ;;  %v2323_v17 = vld [vmem:[#allocation2 + $0x2c0] sm:$0xff]  ;;  %672 = vst.msk [vmem:[#allocation2 + $0xd8] sm:$0xff] %vm644_vm3, %v639_v38 }
 0x1da   : > { %671 = vst.msk [vmem:[#allocation2 + $0xd0] sm:$0xff] %vm644_vm3, %v638_v40  ;;  %3612 = vmatprep.mubr.msk.f32.mxu0 %vm644_vm3, %v2323_v17 }
 0x1db   : > { %v1311_v43 = vpop.permute.xlu1 %1310 }
 0x1dc   : > { %v1309_v58 = vpop.permute.xlu0 %1308  ;;  %v1507_v9 = vsel %vm578_vm1, %v4950_v63, %v1311_v43 }
 0x1dd   : > { %v2324_v18 = vld [vmem:[#allocation2 + $0x2c8] sm:$0xff]  ;;  %v1506_v32 = vsel %vm578_vm1, %v4938_v46, %v1309_v58 }
 0x1de   : > { %v3578_v45 = vpop.f32.mrf.mxu0  ;;  %3613 = vmatmul.mubr.msk.f32.gmra.mxu0 %vm644_vm3, %v2324_v18 }
 0x1df   : > { %v2659_v52 = vadd.f32 %v3578_v45, %v2145_v29  ;;  %v411_v41 = vpop.permute.xlu1 %410 }
 0x1e0   : > { %v1437_v7 = vpop.permute.xlu0 %1436  ;;  %v2499_v51 = vpop.f32.mrf.mxu0  ;;  %v1605_v54 = vld [vmem:[#allocation2 + $0xd8] sm:$0xff]  ;;  %v607_v36 = vsel %vm578_vm1, %v4896_v47, %v411_v41 }
 0x1e1   : > { %v4953_v48 = vadd.f32 %v4943_v44, %v2659_v52  ;;  %v1538_v6 = vsel %vm611_vm2, %v1506_v32, %v1437_v7  ;;  %v2658_v28 = vadd.f32 %v2499_v51, %v2140_v62  ;;  %v1604_v23 = vld [vmem:[#allocation2 + $0xd0] sm:$0xff]  ;;  %v3191_v52 = vld [vmem:[%s3853_s19 + $0x180] sm:$0xff] }
 0x1e2   : > { %1571 = vst.msk [vmem:[#allocation2 + $0x2d0] sm:$0xff] %vm644_vm3, %v1538_v6  ;;  %3563 = vmatprep.mubr.msk.f32.mxu1 %vm644_vm3, %v1604_v23 }
 0x1e3   : > { %v2729_v2 = vsub.f32 0.0, %v4953_v48  ;;  %v4960_v37 = vadd.f32 %v4943_v44, %v2658_v28  ;;  %3564 = vmatmul.mubr.msk.f32.gmra.mxu1 %vm644_vm3, %v1605_v54  ;;  %v413_v27 = vpop.permute.xlu1 %412  ;;  %v3529_v17 = vpop.f32.mrf.mxu1  ;;  %v3192_v54 = vld [vmem:[%s3853_s19 + $0x188] sm:$0xff] }
 0x1e4   : > { %v1439_v16 = vpop.permute.xlu0 %1438  ;;  %v608_v53 = vsel %vm578_vm1, %v4908_v50, %v413_v27  ;;  %v2155_v62 = vadd.f32 %v3529_v17, %v4826_v10 }
 0x1e5   : > { %v2762_v55 = vmul.f32 1.442695, %v2729_v2  ;;  %v2728_v57 = vsub.f32 0.0, %v4960_v37  ;;  %v1539_v25 = vsel %vm611_vm2, %v1507_v9, %v1439_v16  ;;  %v2149_v47 = vpop.f32.mrf.mxu1 }
 0x1e6   : > { %1572 = vst.msk [vmem:[#allocation2 + $0x2d8] sm:$0xff] %vm644_vm3, %v1539_v25  ;;  %v2150_v51 = vadd.f32 %v2149_v47, %v4834_v14 }
 0x1e7   : > { %3655 = vpow2.f32 %v2762_v55  ;;  %v2760_v40 = vmul.f32 1.442695, %v2728_v57  ;;  %v541_v29 = vpop.permute.xlu1 %540 }
 0x1e8   : > { %v539_v38 = vpop.permute.xlu0 %538  ;;  %v641_v18 = vsel %vm611_vm2, %v608_v53, %v541_v29 }
 0x1e9   : > { %3657 = vpow2.f32 %v2760_v40  ;;  %v640_v58 = vsel %vm611_vm2, %v607_v36, %v539_v38  ;;  %v2325_v43 = vld [vmem:[#allocation2 + $0x2d0] sm:$0xff]  ;;  %674 = vst.msk [vmem:[#allocation2 + $0xe8] sm:$0xff] %vm644_vm3, %v641_v18 }
 0x1ea   : > { %673 = vst.msk [vmem:[#allocation2 + $0xe0] sm:$0xff] %vm644_vm3, %v640_v58  ;;  %3615 = vmatprep.mubr.msk.f32.mxu0 %vm644_vm3, %v2325_v43 }
 0x1eb   : > { %v1315_v32 = vpop.permute.xlu1 %1314 }
 0x1ec   : > { %v1313_v45 = vpop.permute.xlu0 %1312  ;;  %v1509_v40 = vsel %vm578_vm1, %v3192_v54, %v1315_v32 }
 0x1ed   : > { %v2326_v50 = vld [vmem:[#allocation2 + $0x2d8] sm:$0xff]  ;;  %v1508_v28 = vsel %vm578_vm1, %v3191_v52, %v1313_v45 }
 0x1ee   : > { %v3581_v7 = vpop.f32.mrf.mxu0  ;;  %3616 = vmatmul.mubr.msk.f32.gmra.mxu0 %vm644_vm3, %v2326_v50 }
 0x1ef   : > { %v2661_v6 = vadd.f32 %v3581_v7, %v2155_v62  ;;  %v415_v16 = vpop.permute.xlu1 %414 }
 0x1f0   : > { %v1441_v41 = vpop.permute.xlu0 %1440  ;;  %v2509_v23 = vpop.f32.mrf.mxu0  ;;  %v1607_v57 = vld [vmem:[#allocation2 + $0xe8] sm:$0xff]  ;;  %v609_v45 = vsel %vm578_vm1, %v4938_v46, %v415_v16 }
 0x1f1   : > { %v4984_v2 = vadd.f32 %v4943_v44, %v2661_v6  ;;  %v1540_v9 = vsel %vm611_vm2, %v1508_v28, %v1441_v41  ;;  %v2660_v10 = vadd.f32 %v2509_v23, %v2150_v51  ;;  %v1606_v55 = vld [vmem:[#allocation2 + $0xe0] sm:$0xff]  ;;  %v3193_v23 = vld [vmem:[%s3853_s19 + $0x198] sm:$0xff] }
 0x1f2   : > { %1573 = vst.msk [vmem:[#allocation2 + $0x2e0] sm:$0xff] %vm644_vm3, %v1540_v9  ;;  %3566 = vmatprep.mubr.msk.f32.mxu1 %vm644_vm3, %v1606_v55  ;;  %v3194_v9 = vld [vmem:[%s3853_s19 + $0x1a0] sm:$0xff] }
 0x1f3   : > { %v2731_v14 = vsub.f32 0.0, %v4984_v2  ;;  %v4991_v25 = vadd.f32 %v4943_v44, %v2660_v10  ;;  %3567 = vmatmul.mubr.msk.f32.gmra.mxu1 %vm644_vm3, %v1607_v57  ;;  %v417_v29 = vpop.permute.xlu1 %416  ;;  %v3532_v62 = vpop.f32.mrf.mxu1 }
 0x1f4   : > { %v3656_v27 = vpop.eup %3655  ;;  %v1443_v36 = vpop.permute.xlu0 %1442  ;;  %v610_v32 = vsel %vm578_vm1, %v4950_v63, %v417_v29  ;;  %v2165_v41 = vadd.f32 %v3532_v62, %v4839_v61 }
 0x1f5   : > { %v2825_v17 = vadd.f32 1.0, %v3656_v27  ;;  %v2766_v38 = vmul.f32 1.442695, %v2731_v14  ;;  %v2730_v53 = vsub.f32 0.0, %v4991_v25  ;;  %v1541_v58 = vsel %vm611_vm2, %v1509_v40, %v1443_v36  ;;  %v2159_v46 = vpop.f32.mrf.mxu1 }
 0x1f6   : > { %v3658_v43 = vpop.eup %3657  ;;  %1574 = vst.msk [vmem:[#allocation2 + $0x2e8] sm:$0xff] %vm644_vm3, %v1541_v58  ;;  %v2160_v16 = vadd.f32 %v2159_v46, %v4849_v12 }
 0x1f7   : > { %3659 = vrcp.f32 %v2825_v17  ;;  %v2824_v18 = vadd.f32 1.0, %v3658_v43  ;;  %v2764_v47 = vmul.f32 1.442695, %v2730_v53  ;;  %v545_v7 = vpop.permute.xlu1 %544 }
 0x1f8   : > { %3661 = vpow2.f32 %v2766_v38  ;;  %v543_v52 = vpop.permute.xlu0 %542  ;;  %v643_v6 = vsel %vm611_vm2, %v610_v32, %v545_v7 }
 0x1f9   : > { %3663 = vrcp.f32 %v2824_v18  ;;  %v642_v50 = vsel %vm611_vm2, %v609_v45, %v543_v52  ;;  %v2327_v51 = vld [vmem:[#allocation2 + $0x2e0] sm:$0xff]  ;;  %676 = vst.msk [vmem:[#allocation2 + $0xf8] sm:$0xff] %vm644_vm3, %v643_v6 }
 0x1fa   : > { %3665 = vpow2.f32 %v2764_v47  ;;  %675 = vst.msk [vmem:[#allocation2 + $0xf0] sm:$0xff] %vm644_vm3, %v642_v50  ;;  %3618 = vmatprep.mubr.msk.f32.mxu0 %vm644_vm3, %v2327_v51 }
 0x1fb   : > { %v1319_v63 = vpop.permute.xlu1 %1318 }
 0x1fc   : > { %v1317_v28 = vpop.permute.xlu0 %1316  ;;  %v1511_v40 = vsel %vm578_vm1, %v3194_v9, %v1319_v63 }
 0x1fd   : > { %v2328_v54 = vld [vmem:[#allocation2 + $0x2e8] sm:$0xff]  ;;  %v1510_v57 = vsel %vm578_vm1, %v3193_v23, %v1317_v28 }
 0x1fe   : > { %v3584_v10 = vpop.f32.mrf.mxu0  ;;  %3619 = vmatmul.mubr.msk.f32.gmra.mxu0 %vm644_vm3, %v2328_v54 }
 0x1ff   : > { %v2663_v55 = vadd.f32 %v3584_v10, %v2165_v41  ;;  %v1447_v38 = vpop.permute.xlu1 %1446 }
 0x200   : > { %v1445_v14 = vpop.permute.xlu0 %1444  ;;  %v2519_v27 = vpop.f32.mrf.mxu0  ;;  %v1543_v12 = vsel %vm611_vm2, %v1511_v40, %v1447_v38  ;;  %v1609_v58 = vld [vmem:[#allocation2 + $0xf8] sm:$0xff] }
 0x201   : > { %v5016_v36 = vadd.f32 %v4943_v44, %v2663_v55  ;;  %v1542_v61 = vsel %vm611_vm2, %v1510_v57, %v1445_v14  ;;  %v2662_v17 = vadd.f32 %v2519_v27, %v2160_v16  ;;  %v1608_v53 = vld [vmem:[#allocation2 + $0xf0] sm:$0xff]  ;;  %1576 = vst.msk [vmem:[#allocation2 + $0x2f8] sm:$0xff] %vm644_vm3, %v1543_v12 }
 0x202   : > { %1575 = vst.msk [vmem:[#allocation2 + $0x2f0] sm:$0xff] %vm644_vm3, %v1542_v61  ;;  %3569 = vmatprep.mubr.msk.f32.mxu1 %vm644_vm3, %v1608_v53 }
 0x203   : > { %v2733_v29 = vsub.f32 0.0, %v5016_v36  ;;  %v5024_v43 = vadd.f32 %v4943_v44, %v2662_v17  ;;  %3570 = vmatmul.mubr.msk.f32.gmra.mxu1 %vm644_vm3, %v1609_v58  ;;  %v3535_v28 = vpop.f32.mrf.mxu1 }
 0x204   : > { %v3660_v18 = vpop.eup %3659  ;;  %v2175_v63 = vadd.f32 %v3535_v28, %v4857_v26 }
 0x205   : > { %v3662_v47 = vpop.eup %3661  ;;  %v2859_v45 = vmul.f32 %v3660_v18, %v4953_v48  ;;  %v2770_v62 = vmul.f32 1.442695, %v2733_v29  ;;  %v2732_v52 = vsub.f32 0.0, %v5024_v43  ;;  %v2169_v23 = vpop.f32.mrf.mxu1 }
 0x206   : > { %v3664_v32 = vpop.eup %3663  ;;  %v2827_v50 = vadd.f32 1.0, %v3662_v47 }
 0x207   : > { %v3666_v7 = vpop.eup %3665  ;;  %2921 = vst [vmem:[%s5031_s12 + $0x8] sm:$0xff] %v2859_v45  ;;  %v2857_v51 = vmul.f32 %v3664_v32, %v4960_v37  ;;  %3667 = vpow2.f32 %v2770_v62  ;;  %v2768_v6 = vmul.f32 1.442695, %v2732_v52  ;;  %v2170_v37 = vadd.f32 %v2169_v23, %v4867_v42 }
 0x208   : > { %3669 = vrcp.f32 %v2827_v50  ;;  %v2826_v46 = vadd.f32 1.0, %v3666_v7  ;;  %v2330_v48 = vld [vmem:[#allocation2 + $0x2f8] sm:$0xff] }
 0x209   : > { %2920 = vst [vmem:[%s5031_s12] sm:$0xff] %v2857_v51  ;;  %3671 = vpow2.f32 %v2768_v6  ;;  %v2329_v41 = vld [vmem:[#allocation2 + $0x2f0] sm:$0xff] }
 0x20a   : > { %3673 = vrcp.f32 %v2826_v46  ;;  %3621 = vmatprep.mubr.msk.f32.mxu0 %vm644_vm3, %v2329_v41 }
 0x20b   : > { %3622 = vmatmul.mubr.msk.f32.gmra.mxu0 %vm644_vm3, %v2330_v48 }
 0x20e   : > { %v3587_v54 = vpop.f32.mrf.mxu0 }
 0x20f   : > { %v2665_v9 = vadd.f32 %v3587_v54, %v2175_v63 }
 0x210   : > { %v2529_v10 = vpop.f32.mrf.mxu0 }
 0x211   : > { %v5043_v16 = vadd.f32 %v4943_v44, %v2665_v9  ;;  %v2664_v55 = vadd.f32 %v2529_v10, %v2170_v37 }
 0x213   : > { %v2735_v57 = vsub.f32 0.0, %v5043_v16  ;;  %v5047_v14 = vadd.f32 %v4943_v44, %v2664_v55  ;;  %v3538_v18 = vpop.f32.mrf.mxu1 }
 0x214   : > { %v3668_v27 = vpop.eup %3667  ;;  %v2185_v45 = vadd.f32 %v3538_v18, %v4873_v35 }
 0x215   : > { %v3670_v40 = vpop.eup %3669  ;;  %v2829_v61 = vadd.f32 1.0, %v3668_v27  ;;  %v2774_v26 = vmul.f32 1.442695, %v2735_v57  ;;  %v2734_v17 = vsub.f32 0.0, %v5047_v14  ;;  %v2179_v47 = vpop.f32.mrf.mxu1 }
 0x216   : > { %v3672_v42 = vpop.eup %3671  ;;  %v2863_v38 = vmul.f32 %v3670_v40, %v4984_v2  ;;  %v2180_v52 = vadd.f32 %v2179_v47, %v4881_v3 }
 0x217   : > { %v3674_v53 = vpop.eup %3673  ;;  %3675 = vrcp.f32 %v2829_v61  ;;  %v2828_v12 = vadd.f32 1.0, %v3672_v42  ;;  %v2772_v58 = vmul.f32 1.442695, %v2734_v17 }
 0x218   : > { %2923 = vst [vmem:[%s5031_s12 + $0x18] sm:$0xff] %v2863_v38  ;;  %v2861_v29 = vmul.f32 %v3674_v53, %v4991_v25  ;;  %3677 = vpow2.f32 %v2774_v26 }
 0x219   : > { %3679 = vrcp.f32 %v2828_v12 }
 0x21a   : > { %2922 = vst [vmem:[%s5031_s12 + $0x10] sm:$0xff] %v2861_v29  ;;  %3681 = vpow2.f32 %v2772_v58 }
 0x21e   : > { %v3590_v62 = vpop.f32.mrf.mxu0 }
 0x21f   : > { %v2667_v2 = vadd.f32 %v3590_v62, %v2185_v45 }
 0x220   : > { %v2539_v32 = vpop.f32.mrf.mxu0 }
 0x221   : > { %v2705_v50 = vadd.f32 %v4943_v44, %v2667_v2  ;;  %v2666_v7 = vadd.f32 %v2539_v32, %v2180_v52 }
 0x223   : > { %v2737_v51 = vsub.f32 0.0, %v2705_v50  ;;  %v5058_v25 = vadd.f32 %v4943_v44, %v2666_v7  ;;  %v3541_v9 = vpop.f32.mrf.mxu1 }
 0x224   : > { %v3676_v6 = vpop.eup %3675 }
 0x225   : > { %v3678_v46 = vpop.eup %3677  ;;  %v2867_v28 = vmul.f32 %v3676_v6, %v5016_v36  ;;  %v2778_v41 = vmul.f32 1.442695, %v2737_v51  ;;  %v2736_v35 = vsub.f32 0.0, %v5058_v25  ;;  %v2189_v10 = vpop.f32.mrf.mxu1  ;;  %v2195_v36 = vadd.f32 %v3541_v9, %v4890_v19 }
 0x226   : > { %v3680_v48 = vpop.eup %3679  ;;  %v2831_v23 = vadd.f32 1.0, %v3678_v46  ;;  %v2190_v57 = vadd.f32 %v2189_v10, %v4899_v34 }
 0x227   : > { %v3682_v3 = vpop.eup %3681  ;;  %2925 = vst [vmem:[%s5031_s12 + $0x28] sm:$0xff] %v2867_v28  ;;  %v2865_v63 = vmul.f32 %v3680_v48, %v5024_v43  ;;  %3683 = vpow2.f32 %v2778_v41  ;;  %v2776_v54 = vmul.f32 1.442695, %v2736_v35 }
 0x228   : > { %3685 = vrcp.f32 %v2831_v23  ;;  %v2830_v37 = vadd.f32 1.0, %v3682_v3 }
 0x229   : > { %2924 = vst [vmem:[%s5031_s12 + $0x20] sm:$0xff] %v2865_v63  ;;  %3687 = vpow2.f32 %v2776_v54 }
 0x22a   : > { %3689 = vrcp.f32 %v2830_v37 }
 0x22e   : > { %v3593_v55 = vpop.f32.mrf.mxu0 }
 0x22f   : > { %v2669_v27 = vadd.f32 %v3593_v55, %v2195_v36 }
 0x230   : > { %v2549_v40 = vpop.f32.mrf.mxu0 }
 0x231   : > { %v5068_v61 = vadd.f32 %v4943_v44, %v2669_v27  ;;  %v2668_v43 = vadd.f32 %v2549_v40, %v2190_v57 }
 0x233   : > { %v2739_v26 = vsub.f32 0.0, %v5068_v61  ;;  %v5072_v17 = vadd.f32 %v4943_v44, %v2668_v43  ;;  %v3544_v62 = vpop.f32.mrf.mxu1 }
 0x234   : > { %v3684_v42 = vpop.eup %3683  ;;  %v2205_v2 = vadd.f32 %v3544_v62, %v4905_v4 }
 0x235   : > { %v3686_v38 = vpop.eup %3685  ;;  %v2833_v53 = vadd.f32 1.0, %v3684_v42  ;;  %v2782_v19 = vmul.f32 1.442695, %v2739_v26  ;;  %v2738_v12 = vsub.f32 0.0, %v5072_v17  ;;  %v2199_v52 = vpop.f32.mrf.mxu1 }
 0x236   : > { %v3688_v34 = vpop.eup %3687  ;;  %v2871_v58 = vmul.f32 %v3686_v38, %v5043_v16  ;;  %v2200_v7 = vadd.f32 %v2199_v52, %v4918_v1 }
 0x237   : > { %v3690_v29 = vpop.eup %3689  ;;  %3691 = vrcp.f32 %v2833_v53  ;;  %v2832_v18 = vadd.f32 1.0, %v3688_v34  ;;  %v2780_v47 = vmul.f32 1.442695, %v2738_v12 }
 0x238   : > { %2927 = vst [vmem:[%s5031_s12 + $0x38] sm:$0xff] %v2871_v58  ;;  %v2869_v45 = vmul.f32 %v3690_v29, %v5047_v14  ;;  %3693 = vpow2.f32 %v2782_v19 }
 0x239   : > { %3695 = vrcp.f32 %v2832_v18 }
 0x23a   : > { %2926 = vst [vmem:[%s5031_s12 + $0x30] sm:$0xff] %v2869_v45  ;;  %3697 = vpow2.f32 %v2780_v47 }
 0x23e   : > { %v3596_v32 = vpop.f32.mrf.mxu0 }
 0x23f   : > { %v2671_v16 = vadd.f32 %v3596_v32, %v2205_v2 }
 0x240   : > { %v2559_v51 = vpop.f32.mrf.mxu0 }
 0x241   : > { %v2709_v6 = vadd.f32 %v4943_v44, %v2671_v16  ;;  %v2670_v46 = vadd.f32 %v2559_v51, %v2200_v7 }
 0x243   : > { %v2741_v28 = vsub.f32 0.0, %v2709_v6  ;;  %v5083_v14 = vadd.f32 %v4943_v44, %v2670_v46  ;;  %v3547_v10 = vpop.f32.mrf.mxu1 }
 0x244   : > { %v3692_v41 = vpop.eup %3691 }
 0x245   : > { %v3694_v35 = vpop.eup %3693  ;;  %v2875_v48 = vmul.f32 %v3692_v41, %v2705_v50  ;;  %v2786_v23 = vmul.f32 1.442695, %v2741_v28  ;;  %v2740_v4 = vsub.f32 0.0, %v5083_v14  ;;  %v2209_v36 = vpop.f32.mrf.mxu1  ;;  %v2215_v50 = vadd.f32 %v3547_v10, %v4924_v20 }
 0x246   : > { %v3696_v3 = vpop.eup %3695  ;;  %v2835_v63 = vadd.f32 1.0, %v3694_v35  ;;  %v2210_v57 = vadd.f32 %v2209_v36, %v4933_v56 }
 0x247   : > { %v3698_v54 = vpop.eup %3697  ;;  %2929 = vst [vmem:[%s5031_s12 + $0x48] sm:$0xff] %v2875_v48  ;;  %v2873_v1 = vmul.f32 %v3696_v3, %v5058_v25  ;;  %3699 = vpow2.f32 %v2786_v23  ;;  %v2784_v37 = vmul.f32 1.442695, %v2740_v4 }
 0x248   : > { %3701 = vrcp.f32 %v2835_v63  ;;  %v2834_v9 = vadd.f32 1.0, %v3698_v54 }
 0x249   : > { %2928 = vst [vmem:[%s5031_s12 + $0x40] sm:$0xff] %v2873_v1  ;;  %3703 = vpow2.f32 %v2784_v37 }
 0x24a   : > { %3705 = vrcp.f32 %v2834_v9 }
 0x24e   : > { %v3599_v55 = vpop.f32.mrf.mxu0 }
 0x24f   : > { %v2673_v27 = vadd.f32 %v3599_v55, %v2215_v50 }
 0x250   : > { %v2569_v40 = vpop.f32.mrf.mxu0 }
 0x251   : > { %v5092_v43 = vadd.f32 %v4943_v44, %v2673_v27  ;;  %v2672_v25 = vadd.f32 %v2569_v40, %v2210_v57 }
 0x253   : > { %v2743_v26 = vsub.f32 0.0, %v5092_v43  ;;  %v5096_v42 = vadd.f32 %v4943_v44, %v2672_v25  ;;  %v3550_v45 = vpop.f32.mrf.mxu1 }
 0x254   : > { %v3700_v38 = vpop.eup %3699  ;;  %v2225_v52 = vadd.f32 %v3550_v45, %v4797_v15 }
 0x255   : > { %v3702_v53 = vpop.eup %3701  ;;  %v2837_v19 = vadd.f32 1.0, %v3700_v38  ;;  %v2790_v20 = vmul.f32 1.442695, %v2743_v26  ;;  %v2742_v12 = vsub.f32 0.0, %v5096_v42  ;;  %v2219_v62 = vpop.f32.mrf.mxu1 }
 0x256   : > { %v3704_v56 = vpop.eup %3703  ;;  %v2879_v34 = vmul.f32 %v3702_v53, %v5068_v61  ;;  %v2220_v32 = vadd.f32 %v2219_v62, %v4806_v31 }
 0x257   : > { %v3706_v58 = vpop.eup %3705  ;;  %3707 = vrcp.f32 %v2837_v19  ;;  %v2836_v29 = vadd.f32 1.0, %v3704_v56  ;;  %v2788_v18 = vmul.f32 1.442695, %v2742_v12 }
 0x258   : > { %2931 = vst [vmem:[%s5031_s12 + $0x58] sm:$0xff] %v2879_v34  ;;  %v2877_v47 = vmul.f32 %v3706_v58, %v5072_v17  ;;  %3709 = vpow2.f32 %v2790_v20 }
 0x259   : > { %3711 = vrcp.f32 %v2836_v29 }
 0x25a   : > { %2930 = vst [vmem:[%s5031_s12 + $0x50] sm:$0xff] %v2877_v47  ;;  %3713 = vpow2.f32 %v2788_v18 }
 0x25e   : > { %v3602_v2 = vpop.f32.mrf.mxu0 }
 0x25f   : > { %v2675_v61 = vadd.f32 %v3602_v2, %v2225_v52 }
 0x260   : > { %v2579_v7 = vpop.f32.mrf.mxu0 }
 0x261   : > { %v2713_v16 = vadd.f32 %v4943_v44, %v2675_v61  ;;  %v2674_v51 = vadd.f32 %v2579_v7, %v2220_v32 }
 0x263   : > { %v2745_v46 = vsub.f32 0.0, %v2713_v16  ;;  %v5107_v17 = vadd.f32 %v4943_v44, %v2674_v51  ;;  %v3553_v1 = vpop.f32.mrf.mxu1 }
 0x264   : > { %v3708_v28 = vpop.eup %3707 }
 0x265   : > { %v3710_v41 = vpop.eup %3709  ;;  %v2883_v35 = vmul.f32 %v3708_v28, %v2709_v6  ;;  %v2794_v48 = vmul.f32 1.442695, %v2745_v46  ;;  %v2744_v15 = vsub.f32 0.0, %v5107_v17  ;;  %v2229_v37 = vpop.f32.mrf.mxu1  ;;  %v2235_v6 = vadd.f32 %v3553_v1, %v4813_v33 }
 0x266   : > { %v3712_v23 = vpop.eup %3711  ;;  %v2839_v4 = vadd.f32 1.0, %v3710_v41  ;;  %v2230_v10 = vadd.f32 %v2229_v37, %v4822_v21 }
 0x267   : > { %v3714_v3 = vpop.eup %3713  ;;  %2933 = vst [vmem:[%s5031_s12 + $0x68] sm:$0xff] %v2883_v35  ;;  %v2881_v31 = vmul.f32 %v3712_v23, %v5083_v14  ;;  %3715 = vpow2.f32 %v2794_v48  ;;  %v2792_v63 = vmul.f32 1.442695, %v2744_v15 }
 0x268   : > { %3717 = vrcp.f32 %v2839_v4  ;;  %v2838_v54 = vadd.f32 1.0, %v3714_v3 }
 0x269   : > { %2932 = vst [vmem:[%s5031_s12 + $0x60] sm:$0xff] %v2881_v31  ;;  %3719 = vpow2.f32 %v2792_v63 }
 0x26a   : > { %3721 = vrcp.f32 %v2838_v54 }
 0x26e   : > { %v3605_v9 = vpop.f32.mrf.mxu0 }
 0x26f   : > { %v2677_v36 = vadd.f32 %v3605_v9, %v2235_v6 }
 0x270   : > { %v2589_v50 = vpop.f32.mrf.mxu0 }
 0x271   : > { %v5116_v55 = vadd.f32 %v4943_v44, %v2677_v36  ;;  %v2676_v14 = vadd.f32 %v2589_v50, %v2230_v10 }
 0x273   : > { %v2747_v57 = vsub.f32 0.0, %v5116_v55  ;;  %v5120_v27 = vadd.f32 %v4943_v44, %v2676_v14  ;;  %v3556_v34 = vpop.f32.mrf.mxu1 }
 0x274   : > { %v3716_v40 = vpop.eup %3715  ;;  %v2245_v29 = vadd.f32 %v3556_v34, %v4829_v8 }
 0x275   : > { %v3718_v25 = vpop.eup %3717  ;;  %v2841_v26 = vadd.f32 1.0, %v3716_v40  ;;  %v2798_v33 = vmul.f32 1.442695, %v2747_v57  ;;  %v2746_v38 = vsub.f32 0.0, %v5120_v27  ;;  %v2239_v58 = vpop.f32.mrf.mxu1 }
 0x276   : > { %v3720_v21 = vpop.eup %3719  ;;  %v2887_v53 = vmul.f32 %v3718_v25, %v5092_v43  ;;  %v2240_v47 = vadd.f32 %v2239_v58, %v4836_v22 }
 0x277   : > { %v3722_v19 = vpop.eup %3721  ;;  %3723 = vrcp.f32 %v2841_v26  ;;  %v2840_v20 = vadd.f32 1.0, %v3720_v21  ;;  %v2796_v12 = vmul.f32 1.442695, %v2746_v38 }
 0x278   : > { %2935 = vst [vmem:[%s5031_s12 + $0x78] sm:$0xff] %v2887_v53  ;;  %v2885_v56 = vmul.f32 %v3722_v19, %v5096_v42  ;;  %3725 = vpow2.f32 %v2798_v33 }
 0x279   : > { %3727 = vrcp.f32 %v2840_v20 }
 0x27a   : > { %2934 = vst [vmem:[%s5031_s12 + $0x70] sm:$0xff] %v2885_v56  ;;  %3729 = vpow2.f32 %v2796_v12 }
 0x27e   : > { %v3608_v18 = vpop.f32.mrf.mxu0 }
 0x27f   : > { %v2679_v43 = vadd.f32 %v3608_v18, %v2245_v29 }
 0x280   : > { %v2599_v45 = vpop.f32.mrf.mxu0 }
 0x281   : > { %v2717_v62 = vadd.f32 %v4943_v44, %v2679_v43  ;;  %v2678_v52 = vadd.f32 %v2599_v45, %v2240_v47 }
 0x283   : > { %v2749_v2 = vsub.f32 0.0, %v2717_v62  ;;  %v5131_v42 = vadd.f32 %v4943_v44, %v2678_v52  ;;  %v3559_v15 = vpop.f32.mrf.mxu1 }
 0x284   : > { %v3724_v32 = vpop.eup %3723 }
 0x285   : > { %v3726_v61 = vpop.eup %3725  ;;  %v2891_v7 = vmul.f32 %v3724_v32, %v2713_v16  ;;  %v2802_v51 = vmul.f32 1.442695, %v2749_v2  ;;  %v2748_v8 = vsub.f32 0.0, %v5131_v42  ;;  %v2249_v23 = vpop.f32.mrf.mxu1  ;;  %v2255_v16 = vadd.f32 %v3559_v15, %v4843_v60 }
 0x286   : > { %v3728_v46 = vpop.eup %3727  ;;  %v2843_v28 = vadd.f32 1.0, %v3726_v61  ;;  %v2250_v3 = vadd.f32 %v2249_v23, %v4854_v39 }
 0x287   : > { %v3730_v41 = vpop.eup %3729  ;;  %2937 = vst [vmem:[%s5031_s12 + $0x88] sm:$0xff] %v2891_v7  ;;  %v2889_v22 = vmul.f32 %v3728_v46, %v5107_v17  ;;  %3731 = vpow2.f32 %v2802_v51  ;;  %v2800_v35 = vmul.f32 1.442695, %v2748_v8 }
 0x288   : > { %3733 = vrcp.f32 %v2843_v28  ;;  %v2842_v48 = vadd.f32 1.0, %v3730_v41 }
 0x289   : > { %2936 = vst [vmem:[%s5031_s12 + $0x80] sm:$0xff] %v2889_v22  ;;  %3735 = vpow2.f32 %v2800_v35 }
 0x28a   : > { %3737 = vrcp.f32 %v2842_v48 }
 0x28e   : > { %v3611_v4 = vpop.f32.mrf.mxu0 }
 0x28f   : > { %v2681_v31 = vadd.f32 %v3611_v4, %v2255_v16 }
 0x290   : > { %v2609_v63 = vpop.f32.mrf.mxu0 }
 0x291   : > { %v5140_v54 = vadd.f32 %v4943_v44, %v2681_v31  ;;  %v2680_v17 = vadd.f32 %v2609_v63, %v2250_v3 }
 0x293   : > { %v2751_v1 = vsub.f32 0.0, %v5140_v54  ;;  %v5144_v37 = vadd.f32 %v4943_v44, %v2680_v17  ;;  %v3562_v26 = vpop.f32.mrf.mxu1 }
 0x294   : > { %v3732_v6 = vpop.eup %3731  ;;  %v2265_v38 = vadd.f32 %v3562_v26, %v4859_v11 }
 0x295   : > { %v3734_v9 = vpop.eup %3733  ;;  %v2845_v10 = vadd.f32 1.0, %v3732_v6  ;;  %v2806_v60 = vmul.f32 1.442695, %v2751_v1  ;;  %v2750_v36 = vsub.f32 0.0, %v5144_v37  ;;  %v2259_v33 = vpop.f32.mrf.mxu1 }
 0x296   : > { %v3736_v39 = vpop.eup %3735  ;;  %v2895_v50 = vmul.f32 %v3734_v9, %v5116_v55  ;;  %v2260_v53 = vadd.f32 %v2259_v33, %v4870_v30 }
 0x297   : > { %v3738_v14 = vpop.eup %3737  ;;  %3739 = vrcp.f32 %v2845_v10  ;;  %v2844_v57 = vadd.f32 1.0, %v3736_v39  ;;  %v2804_v40 = vmul.f32 1.442695, %v2750_v36 }
 0x298   : > { %2939 = vst [vmem:[%s5031_s12 + $0x98] sm:$0xff] %v2895_v50  ;;  %v2893_v25 = vmul.f32 %v3738_v14, %v5120_v27  ;;  %3741 = vpow2.f32 %v2806_v60 }
 0x299   : > { %3743 = vrcp.f32 %v2844_v57 }
 0x29a   : > { %2938 = vst [vmem:[%s5031_s12 + $0x90] sm:$0xff] %v2893_v25  ;;  %3745 = vpow2.f32 %v2804_v40 }
 0x29e   : > { %v3614_v21 = vpop.f32.mrf.mxu0 }
 0x29f   : > { %v2683_v55 = vadd.f32 %v3614_v21, %v2265_v38 }
 0x2a0   : > { %v2619_v19 = vpop.f32.mrf.mxu0 }
 0x2a1   : > { %v2721_v20 = vadd.f32 %v4943_v44, %v2683_v55  ;;  %v2682_v12 = vadd.f32 %v2619_v19, %v2260_v53 }
 0x2a3   : > { %v2753_v56 = vsub.f32 0.0, %v2721_v20  ;;  %v5155_v27 = vadd.f32 %v4943_v44, %v2682_v12  ;;  %v3565_v32 = vpop.f32.mrf.mxu1 }
 0x2a4   : > { %v3740_v34 = vpop.eup %3739 }
 0x2a5   : > { %v3742_v58 = vpop.eup %3741  ;;  %v2899_v29 = vmul.f32 %v3740_v34, %v2717_v62  ;;  %v2810_v18 = vmul.f32 1.442695, %v2753_v56  ;;  %v2752_v11 = vsub.f32 0.0, %v5155_v27  ;;  %v2269_v61 = vpop.f32.mrf.mxu1  ;;  %v2275_v62 = vadd.f32 %v3565_v32, %v4876_v13 }
 0x2a6   : > { %v3744_v47 = vpop.eup %3743  ;;  %v2847_v43 = vadd.f32 1.0, %v3742_v58  ;;  %v2270_v51 = vadd.f32 %v2269_v61, %v4885_v49 }
 0x2a7   : > { %v3746_v45 = vpop.eup %3745  ;;  %2941 = vst [vmem:[%s5031_s12 + $0xa8] sm:$0xff] %v2899_v29  ;;  %v2897_v30 = vmul.f32 %v3744_v47, %v5131_v42  ;;  %3747 = vpow2.f32 %v2810_v18  ;;  %v2808_v52 = vmul.f32 1.442695, %v2752_v11 }
 0x2a8   : > { %3749 = vrcp.f32 %v2847_v43  ;;  %v2846_v2 = vadd.f32 1.0, %v3746_v45 }
 0x2a9   : > { %2940 = vst [vmem:[%s5031_s12 + $0xa0] sm:$0xff] %v2897_v30  ;;  %3751 = vpow2.f32 %v2808_v52 }
 0x2aa   : > { %3753 = vrcp.f32 %v2846_v2 }
 0x2ae   : > { %v3617_v7 = vpop.f32.mrf.mxu0 }
 0x2af   : > { %v2685_v8 = vadd.f32 %v3617_v7, %v2275_v62 }
 0x2b0   : > { %v2629_v46 = vpop.f32.mrf.mxu0 }
 0x2b1   : > { %v5164_v28 = vadd.f32 %v4943_v44, %v2685_v8  ;;  %v2684_v42 = vadd.f32 %v2629_v46, %v2270_v51 }
 0x2b3   : > { %v2755_v41 = vsub.f32 0.0, %v5164_v28  ;;  %v5168_v22 = vadd.f32 %v4943_v44, %v2684_v42  ;;  %v3568_v17 = vpop.f32.mrf.mxu1 }
 0x2b4   : > { %v3748_v35 = vpop.eup %3747  ;;  %v2285_v6 = vadd.f32 %v3568_v17, %v4893_v5 }
 0x2b5   : > { %v3750_v48 = vpop.eup %3749  ;;  %v2849_v15 = vadd.f32 1.0, %v3748_v35  ;;  %v2814_v13 = vmul.f32 1.442695, %v2755_v41  ;;  %v2754_v23 = vsub.f32 0.0, %v5168_v22  ;;  %v2279_v1 = vpop.f32.mrf.mxu1 }
 0x2b6   : > { %v3752_v49 = vpop.eup %3751  ;;  %v2903_v16 = vmul.f32 %v3750_v48, %v5140_v54  ;;  %v2280_v10 = vadd.f32 %v2279_v1, %v4901_v59 }
 0x2b7   : > { %v3754_v4 = vpop.eup %3753  ;;  %3755 = vrcp.f32 %v2849_v15  ;;  %v2848_v3 = vadd.f32 1.0, %v3752_v49  ;;  %v2812_v31 = vmul.f32 1.442695, %v2754_v23 }
 0x2b8   : > { %2943 = vst [vmem:[%s5031_s12 + $0xb8] sm:$0xff] %v2903_v16  ;;  %v2901_v63 = vmul.f32 %v3754_v4, %v5144_v37  ;;  %3757 = vpow2.f32 %v2814_v13 }
 0x2b9   : > { %3759 = vrcp.f32 %v2848_v3 }
 0x2ba   : > { %2942 = vst [vmem:[%s5031_s12 + $0xb0] sm:$0xff] %v2901_v63  ;;  %3761 = vpow2.f32 %v2812_v31 }
 0x2be   : > { %v3620_v9 = vpop.f32.mrf.mxu0 }
 0x2bf   : > { %v2687_v54 = vadd.f32 %v3620_v9, %v2285_v6 }
 0x2c0   : > { %v2639_v60 = vpop.f32.mrf.mxu0 }
 0x2c1   : > { %v2725_v36 = vadd.f32 %v4943_v44, %v2687_v54  ;;  %v2686_v39 = vadd.f32 %v2639_v60, %v2280_v10 }
 0x2c3   : > { %v2757_v50 = vsub.f32 0.0, %v2725_v36  ;;  %v2724_v37 = vadd.f32 %v4943_v44, %v2686_v39  ;;  %v3571_v33 = vpop.f32.mrf.mxu1 }
 0x2c4   : > { %v3756_v14 = vpop.eup %3755  ;;  %v2295_v12 = vadd.f32 %v3571_v33, %v4911_v0 }
 0x2c5   : > { %v3758_v57 = vpop.eup %3757  ;;  %v2907_v40 = vmul.f32 %v3756_v14, %v2721_v20  ;;  %v2818_v25 = vmul.f32 1.442695, %v2757_v50  ;;  %v2756_v26 = vsub.f32 0.0, %v2724_v37  ;;  %v2289_v19 = vpop.f32.mrf.mxu1 }
 0x2c6   : > { %v3760_v5 = vpop.eup %3759  ;;  %v2851_v38 = vadd.f32 1.0, %v3758_v57  ;;  %v2290_v56 = vadd.f32 %v2289_v19, %v4921_v24 }
 0x2c7   : > { %v3762_v21 = vpop.eup %3761  ;;  %2945 = vst [vmem:[%s5031_s12 + $0xc8] sm:$0xff] %v2907_v40  ;;  %v2905_v59 = vmul.f32 %v3760_v5, %v5155_v27  ;;  %3763 = vpow2.f32 %v2818_v25  ;;  %v2816_v53 = vmul.f32 1.442695, %v2756_v26 }
 0x2c8   : > { %3765 = vrcp.f32 %v2851_v38  ;;  %v2850_v55 = vadd.f32 1.0, %v3762_v21 }
 0x2c9   : > { %2944 = vst [vmem:[%s5031_s12 + $0xc0] sm:$0xff] %v2905_v59  ;;  %3767 = vpow2.f32 %v2816_v53 }
 0x2ca   : > { %3769 = vrcp.f32 %v2850_v55 }
 0x2cb   : > { %v3623_v20 = vpop.f32.mrf.mxu0 }
 0x2cc   : > { %v2689_v34 = vadd.f32 %v3623_v20, %v2295_v12 }
 0x2cd   : > { %v2649_v58 = vpop.f32.mrf.mxu0 }
 0x2ce   : > { %v2727_v29 = vadd.f32 %v4943_v44, %v2689_v34  ;;  %v2688_v18 = vadd.f32 %v2649_v58, %v2290_v56 }
 0x2d0   : > { %v2759_v27 = vsub.f32 0.0, %v2727_v29  ;;  %v2726_v11 = vadd.f32 %v4943_v44, %v2688_v18 }
 0x2d2   : > { %v2822_v47 = vmul.f32 1.442695, %v2759_v27  ;;  %v2758_v43 = vsub.f32 0.0, %v2726_v11 }
 0x2d4   : > { %v3764_v45 = vpop.eup %3763  ;;  %3771 = vpow2.f32 %v2822_v47  ;;  %v2820_v30 = vmul.f32 1.442695, %v2758_v43 }
 0x2d5   : > { %v3766_v52 = vpop.eup %3765  ;;  %v2853_v0 = vadd.f32 1.0, %v3764_v45 }
 0x2d6   : > { %v3768_v2 = vpop.eup %3767  ;;  %v2911_v24 = vmul.f32 %v3766_v52, %v5164_v28  ;;  %3773 = vpow2.f32 %v2820_v30 }
 0x2d7   : > { %v3770_v32 = vpop.eup %3769  ;;  %3775 = vrcp.f32 %v2853_v0  ;;  %v2852_v61 = vadd.f32 1.0, %v3768_v2 }
 0x2d8   : > { %2947 = vst [vmem:[%s5031_s12 + $0xd8] sm:$0xff] %v2911_v24  ;;  %v2909_v44 = vmul.f32 %v3770_v32, %v5168_v22 }
 0x2d9   : > { %3777 = vrcp.f32 %v2852_v61 }
 0x2da   : > { %2946 = vst [vmem:[%s5031_s12 + $0xd0] sm:$0xff] %v2909_v44 }
 0x2e1   : > { %v3772_v62 = vpop.eup %3771 }
 0x2e2   : > { %v2855_v7 = vadd.f32 1.0, %v3772_v62 }
 0x2e3   : > { %v3774_v51 = vpop.eup %3773 }
 0x2e4   : > { %v3776_v8 = vpop.eup %3775  ;;  %3779 = vrcp.f32 %v2855_v7  ;;  %v2854_v46 = vadd.f32 1.0, %v3774_v51 }
 0x2e5   : > { %v2915_v28 = vmul.f32 %v3776_v8, %v2725_v36 }
 0x2e6   : > { %v3778_v42 = vpop.eup %3777  ;;  %3781 = vrcp.f32 %v2854_v46 }
 0x2e7   : > { %2949 = vst [vmem:[%s5031_s12 + $0xe8] sm:$0xff] %v2915_v28  ;;  %v2913_v41 = vmul.f32 %v3778_v42, %v2724_v37 }
 0x2e9   : > { %2948 = vst [vmem:[%s5031_s12 + $0xe0] sm:$0xff] %v2913_v41 }
 0x2f1   : > { %v3780_v35 = vpop.eup %3779 }
 0x2f2   : > { %v2919_v48 = vmul.f32 %v3780_v35, %v2727_v29 }
 0x2f3   : > { %v3782_v15 = vpop.eup %3781 }
 0x2f4   : > { %2951 = vst [vmem:[%s5031_s12 + $0xf8] sm:$0xff] %v2919_v48  ;;  %v2917_v22 = vmul.f32 %v3782_v15, %v2726_v11 }
 0x2f6   : > { %2950 = vst [vmem:[%s5031_s12 + $0xf0] sm:$0xff] %v2917_v22 }
 0x2f7 PF: > { %s13_s14 = sadd.s32 1, %s3805_s14   ;;  %s5207_s12 = smov %s3801_s13 }
 0x2f8   : > { %p10_p5 = scmp.ge.s32.totalorder %s13_s14, 4   ;;  %s5208_s13 = smov %s5210_s15 }
 0x2fa   :  { %12 = sbr.rel (!%p10_p5) target bundleno = 2 (0x2), region = 80 }

</bundles_post_ra>
